<compile_context>
chip_gen: v7x
topology: tpu7x:2x2x1
jax: 0.10.0
libtpu: 0.0.40
codegen_flags: <defaults>
</compile_context>

<pallas_src>
import functools
import math

import jax
import jax.numpy as jnp
from jax import lax
from jax.experimental import pallas as pl
from jax.experimental.pallas import tpu as pltpu


# ----------------------- generation-aware VMEM budget ------------------------ #

def _vmem_budget():
    try:
        cap = pltpu.get_tpu_info().vmem_capacity_bytes
    except Exception:
        return 32 * 1024 * 1024               # safe fallback
    if cap >= 100 * 1024 * 1024:              # v5e / v6e: 128 MiB physical
        return 96 * 1024 * 1024
    return 48 * 1024 * 1024                   # v7x: 64 MiB physical -> headroom


_VMEM_LIMIT = _vmem_budget()


# ------------------------------ tile pickers -------------------------------- #

def _row_tile(dim, pref):
    """Largest divisor of dim that is a multiple of 8 and <= pref, else dim."""
    t = min(dim, pref)
    t -= t % 8
    while t >= 8:
        if dim % t == 0:
            return t
        t -= 8
    return dim


def _lane_tile(dim, pref):
    """Largest divisor of dim that is a multiple of 128 and <= pref, else dim."""
    t = min(dim, pref)
    t -= t % 128
    while t >= 128:
        if dim % t == 0:
            return t
        t -= 128
    return dim


def _linear_tiles(M, N, K, full_n=False, budget=None):
    """Prefer full-extent K (single reduction pass) and 512-row tiles; shrink
    K then M (then N) only if the double-buffered working set exceeds ~half
    the VMEM budget (matters on v7x's 64 MiB)."""
    budget = _VMEM_LIMIT if budget is None else budget
    tm = _row_tile(M, 512)
    tn = N if full_n else _lane_tile(N, 768)
    tk = K

    def ws(tm_, tn_, tk_):
        # 2x-buffered bf16 x / w / (res+out)  +  f32 accumulator  +  LN vectors
        return (2 * 2 * (tm_ * tk_ + tk_ * tn_ + 2 * tm_ * tn_)
                + 4 * tm_ * tn_ + 6 * 4 * tn_)

    while ws(tm, tn, tk) > budget // 2:
        if tk >= 1024 and K % (tk // 2) == 0:
            tk //= 2
        elif tm > 128 and M % (tm // 2) == 0:
            tm //= 2
        elif (not full_n) and tn > 256 and N % (tn // 2) == 0:
            tn //= 2
        else:
            break
    return tm, tn, tk


# ----------------------------- Pallas kernels ------------------------------- #

def _linear_kernel(x_ref, w_ref, b_ref, o_ref, acc_ref, *, activation):
    """Tiled y = act(x @ w + b). K-reduction on grid axis 2, f32 accumulator."""
    @pl.when(pl.program_id(2) == 0)
    def _():
        acc_ref[...] = jnp.zeros_like(acc_ref)

    acc_ref[...] += jnp.dot(
        x_ref[...].astype(jnp.bfloat16),
        w_ref[...].astype(jnp.bfloat16),
        preferred_element_type=jnp.float32,
    )

    @pl.when(pl.program_id(2) == pl.num_programs(2) - 1)
    def _():
        y = acc_ref[...] + b_ref[...]            # f32 epilogue
        if activation == "gelu":
            # TODO(synk): HF BERT uses exact (erf) GELU; tanh approx used here.
            y = jax.nn.gelu(y, approximate=True)
        elif activation == "tanh":
            y = jnp.tanh(y)
        o_ref[...] = y.astype(o_ref.dtype)


def linear(x, w, b, activation="none", out_dtype=jnp.bfloat16):
    """x: (M, K) bf16/f32, w: (K, N) bf16, b: (1, N) f32 -> (M, N) out_dtype."""
    M, K = x.shape
    N = w.shape[1]
    tm, tn, tk = _linear_tiles(M, N, K)
    nk = K // tk
    w_kwargs = {"pipeline_mode": pl.Buffered(3)} if nk >= 3 else {}
    return pl.pallas_call(
        functools.partial(_linear_kernel, activation=activation),
        out_shape=jax.ShapeDtypeStruct((M, N), out_dtype),
        grid_spec=pltpu.PrefetchScalarGridSpec(
            num_scalar_prefetch=0,
            grid=(M // tm, N // tn, nk),
            in_specs=[
                pl.BlockSpec((tm, tk), lambda i, j, k: (i, k)),
                pl.BlockSpec((tk, tn), lambda i, j, k: (k, j), **w_kwargs),
                pl.BlockSpec((1, tn), lambda i, j, k: (0, j)),
            ],
            out_specs=pl.BlockSpec((tm, tn), lambda i, j, k: (i, j)),
            scratch_shapes=[pltpu.VMEM((tm, tn), jnp.float32)],
        ),
        compiler_params=pltpu.CompilerParams(
            dimension_semantics=("parallel", "parallel", "arbitrary"),
            vmem_limit_bytes=_VMEM_LIMIT,
        ),
    )(x, w, b)


def _linear_res_ln_kernel(x_ref, w_ref, b_ref, r_ref, g_ref, be_ref,
                          o_ref, acc_ref):
    """Fused y = LayerNorm(res + x @ w + b); full N per tile so LN sees a row."""
    @pl.when(pl.program_id(1) == 0)
    def _():
        acc_ref[...] = jnp.zeros_like(acc_ref)

    acc_ref[...] += jnp.dot(
        x_ref[...].astype(jnp.bfloat16),
        w_ref[...].astype(jnp.bfloat16),
        preferred_element_type=jnp.float32,
    )

    @pl.when(pl.program_id(1) == pl.num_programs(1) - 1)
    def _():
        y = acc_ref[...] + b_ref[...] + r_ref[...].astype(jnp.float32)
        mu = jnp.mean(y, axis=-1, keepdims=True)
        var = jnp.mean(jnp.square(y - mu), axis=-1, keepdims=True)
        o_ref[...] = ((y - mu) * lax.rsqrt(var + 1e-12) * g_ref[...]
                      + be_ref[...]).astype(o_ref.dtype)


def linear_res_ln(x, w, b, res, gamma, beta, out_dtype=jnp.bfloat16):
    """Dense + residual-add + LayerNorm in one pass (attn_out/ffn never hit HBM)."""
    M, K = x.shape
    N = w.shape[1]
    tm, _, tk = _linear_tiles(M, N, K, full_n=True)
    nk = K // tk
    w_kwargs = {"pipeline_mode": pl.Buffered(3)} if nk >= 3 else {}
    return pl.pallas_call(
        _linear_res_ln_kernel,
        out_shape=jax.ShapeDtypeStruct((M, N), out_dtype),
        grid_spec=pltpu.PrefetchScalarGridSpec(
            num_scalar_prefetch=0,
            grid=(M // tm, nk),
            in_specs=[
                pl.BlockSpec((tm, tk), lambda i, k: (i, k)),
                pl.BlockSpec((tk, N), lambda i, k: (k, 0), **w_kwargs),
                pl.BlockSpec((1, N), lambda i, k: (0, 0)),
                pl.BlockSpec((tm, N), lambda i, k: (i, 0)),
                pl.BlockSpec((1, N), lambda i, k: (0, 0)),
                pl.BlockSpec((1, N), lambda i, k: (0, 0)),
            ],
            out_specs=pl.BlockSpec((tm, N), lambda i, k: (i, 0)),
            scratch_shapes=[pltpu.VMEM((tm, N), jnp.float32)],
        ),
        compiler_params=pltpu.CompilerParams(
            dimension_semantics=("parallel", "arbitrary"),
            vmem_limit_bytes=_VMEM_LIMIT,
        ),
    )(x, w, b, res, gamma, beta)


def _ln_kernel(x_ref, g_ref, b_ref, o_ref):
    x = x_ref[...].astype(jnp.float32)
    mu = jnp.mean(x, axis=-1, keepdims=True)
    var = jnp.mean(jnp.square(x - mu), axis=-1, keepdims=True)
    o_ref[...] = ((x - mu) * lax.rsqrt(var + 1e-12) * g_ref[...]
                  + b_ref[...]).astype(o_ref.dtype)


def layer_norm(x, g, b, out_dtype=jnp.bfloat16):
    """Standalone LayerNorm (embeddings only); f32 math, bf16 output stream."""
    M, H = x.shape
    tm = _row_tile(M, 512)
    return pl.pallas_call(
        _ln_kernel,
        out_shape=jax.ShapeDtypeStruct((M, H), out_dtype),
        grid=(M // tm,),
        in_specs=[pl.BlockSpec((tm, H), lambda i: (i, 0)),
                  pl.BlockSpec((1, H), lambda i: (0, 0)),
                  pl.BlockSpec((1, H), lambda i: (0, 0))],
        out_specs=pl.BlockSpec((tm, H), lambda i: (i, 0)),
        compiler_params=pltpu.CompilerParams(
            dimension_semantics=("parallel",),
            vmem_limit_bytes=_VMEM_LIMIT),
    )(x, g, b)


def _heads_per_group(num_heads, head_dim):
    """Largest head group whose lane width is a multiple of 128 (2 heads at
    real BERT Dh=64); if no aligned split exists, keep all heads together."""
    for hpg in range(min(num_heads, max(1, 128 // head_dim)), 0, -1):
        if num_heads % hpg == 0 and (hpg * head_dim) % 128 == 0:
            return hpg
    return num_heads


def _attn_kernel(qkv_ref, m_ref, o_ref, *, heads_per_group, head_dim, scale):
    """One (batch, head-group) step: grouped [Q|K|V] slab in, (S, gw) out."""
    blk = qkv_ref[0]                       # (S, 3*gw) bf16, grouped columns
    madd = m_ref[0]                        # (1, S) f32 additive key mask
    gw = heads_per_group * head_dim
    outs = []
    for h in range(heads_per_group):       # tiny static loop (<= 2 at BERT scale)
        q = blk[:, h * head_dim:(h + 1) * head_dim]
        k = blk[:, gw + h * head_dim:gw + (h + 1) * head_dim]
        v = blk[:, 2 * gw + h * head_dim:2 * gw + (h + 1) * head_dim]
        q = (q.astype(jnp.float32) * scale).astype(jnp.bfloat16)
        # q @ k^T without materializing the transpose.
        s = lax.dot_general(q, k, (((1,), (1,)), ((), ())),
                            preferred_element_type=jnp.float32)
        s = s + madd
        s = s - jnp.max(s, axis=-1, keepdims=True)     # f32 softmax
        p = jnp.exp(s)
        p = p * pl.reciprocal(jnp.sum(p, axis=-1, keepdims=True), approx=True)
        outs.append(lax.dot_general(p.astype(jnp.bfloat16), v,
                                    (((1,), (0,)), ((), ())),
                                    preferred_element_type=jnp.float32))
    out = outs[0] if heads_per_group == 1 else jnp.concatenate(outs, axis=-1)
    o_ref[0] = out.astype(o_ref.dtype)     # single lane-dense aligned store


def attention(qkv, mask_add, *, num_heads):
    """qkv: (B, S, 3H) bf16 with group-wise [Q_g|K_g|V_g] column layout,
    mask_add: (B, 1, S) f32 -> (B, S, H) bf16 (heads concatenated in order)."""
    # TODO(synk): flash-style q-tiling for long sequences; full (S,S) scores fit
    # comfortably at S=8 (and per head-group at S=512).
    B, S, threeH = qkv.shape
    H = threeH // 3
    Dh = H // num_heads
    hpg = _heads_per_group(num_heads, Dh)
    n_groups = num_heads // hpg
    gw = hpg * Dh
    scale = 1.0 / math.sqrt(Dh)
    return pl.pallas_call(
        functools.partial(_attn_kernel, heads_per_group=hpg, head_dim=Dh,
                          scale=scale),
        out_shape=jax.ShapeDtypeStruct((B, S, H), jnp.bfloat16),
        grid=(B, n_groups),
        in_specs=[
            pl.BlockSpec((1, S, 3 * gw), lambda b, g: (b, 0, g)),
            pl.BlockSpec((1, 1, S), lambda b, g: (b, 0, 0)),
        ],
        out_specs=pl.BlockSpec((1, S, gw), lambda b, g: (b, 0, g)),
        compiler_params=pltpu.CompilerParams(
            dimension_semantics=("parallel", "parallel"),
            vmem_limit_bytes=_VMEM_LIMIT,
        ),
    )(qkv, mask_add)


def _pool_cls_kernel(cls_ref, wp_ref, bp_ref, wc_ref, bc_ref, o_ref):
    """Fused pooler (tanh dense) + classifier head (output lanes padded to 128)."""
    pooled = jnp.tanh(
        jnp.dot(cls_ref[...].astype(jnp.bfloat16), wp_ref[...],
                preferred_element_type=jnp.float32) + bp_ref[...])
    o_ref[...] = jnp.dot(pooled.astype(jnp.bfloat16), wc_ref[...],
                         preferred_element_type=jnp.float32) + bc_ref[...]


def pooler_classifier(cls, wp, bp, wc_pad, bc_pad):
    B = cls.shape[0]
    Np = wc_pad.shape[1]
    return pl.pallas_call(
        _pool_cls_kernel,
        out_shape=jax.ShapeDtypeStruct((B, Np), jnp.float32),
        compiler_params=pltpu.CompilerParams(vmem_limit_bytes=_VMEM_LIMIT),
    )(cls, wp, bp, wc_pad, bc_pad)


# ------------------------------ parameter init ------------------------------ #

CFG = dict(
    vocab=30,          # tiny synthetic vocab (real BERT: 30522)
    type_vocab=2,
    max_pos=16,
    hidden=32,         # real BERT: 768
    heads=4,           # real BERT: 12
    layers=2,          # real BERT: 12
    intermediate=64,   # real BERT: 3072
)


def init_params(key, cfg):
    # TODO(synk): real module loads pretrained 'bert-base-uncased' weights;
    # random init with matching structure is used here.  When loading real
    # weights, W_qkv columns must be permuted into the group-wise layout
    # [Q_g | K_g | V_g] per head group expected by attention().
    H, I, L = cfg["hidden"], cfg["intermediate"], cfg["layers"]

    def nrm(k, shape, dtype=jnp.float32, std=0.02):
        return (std * jax.random.normal(k, shape, dtype=jnp.float32)).astype(dtype)

    keys = iter(jax.random.split(key, 16))
    w_cls = nrm(next(keys), (H, 1))                               # real head is (H, 1)
    params = {
        "word_emb": nrm(next(keys), (cfg["vocab"], H)),
        "pos_emb": nrm(next(keys), (cfg["max_pos"], H)),
        "type_emb": nrm(next(keys), (cfg["type_vocab"], H)),
        "emb_ln_g": jnp.ones((1, H), jnp.float32),
        "emb_ln_b": jnp.zeros((1, H), jnp.float32),
        "wp": nrm(next(keys), (H, H), dtype=jnp.bfloat16),        # pooler dense
        "bp": jnp.zeros((1, H), jnp.float32),
        # classifier weight padded to 128 output lanes (column 0 is real).
        "w_cls_pad": jnp.pad(w_cls, ((0, 0), (0, 127))).astype(jnp.bfloat16),
        "b_cls_pad": jnp.zeros((1, 128), jnp.float32),
        "layers": {   # stacked over the layer axis -> scanned in the forward
            "w_qkv": nrm(next(keys), (L, H, 3 * H), dtype=jnp.bfloat16),
            "b_qkv": jnp.zeros((L, 1, 3 * H), jnp.float32),
            "wo": nrm(next(keys), (L, H, H), dtype=jnp.bfloat16),
            "bo": jnp.zeros((L, 1, H), jnp.float32),
            "ln1_g": jnp.ones((L, 1, H), jnp.float32),
            "ln1_b": jnp.zeros((L, 1, H), jnp.float32),
            "wi": nrm(next(keys), (L, H, I), dtype=jnp.bfloat16),
            "bi": jnp.zeros((L, 1, I), jnp.float32),
            "wf": nrm(next(keys), (L, I, H), dtype=jnp.bfloat16),
            "bf": jnp.zeros((L, 1, H), jnp.float32),
            "ln2_g": jnp.ones((L, 1, H), jnp.float32),
            "ln2_b": jnp.zeros((L, 1, H), jnp.float32),
        },
    }
    return params


# --------------------------------- forward ---------------------------------- #

def bert_forward(params, ids, mask, token_type_ids):
    cfg = CFG
    B, S = ids.shape
    H, Hn = cfg["hidden"], cfg["heads"]
    M = B * S

    # --- embeddings (gathers stay in plain JAX glue) ---
    emb = (jnp.take(params["word_emb"], ids, axis=0)
           + params["pos_emb"][None, :S, :]
           + jnp.take(params["type_emb"], token_type_ids, axis=0))
    h = layer_norm(emb.reshape(M, H), params["emb_ln_g"], params["emb_ln_b"])

    # additive attention mask, (B, 1, S); broadcast per head happens in-kernel.
    mask_add = ((1.0 - mask.astype(jnp.float32)) * -10000.0).reshape(B, 1, S)

    def layer_step(h, lp):
        # fused QKV projection: one (H, 3H) matmul, bf16 output (halves HBM hop)
        qkv = linear(h, lp["w_qkv"], lp["b_qkv"], out_dtype=jnp.bfloat16)
        ctx = attention(qkv.reshape(B, S, 3 * H), mask_add, num_heads=Hn)
        # attention output projection + residual-add + LayerNorm, one kernel
        h1 = linear_res_ln(ctx.reshape(M, H), lp["wo"], lp["bo"],
                           res=h, gamma=lp["ln1_g"], beta=lp["ln1_b"])
        # FFN: dense+GELU, then dense + residual-add + LayerNorm, one kernel
        inter = linear(h1, lp["wi"], lp["bi"], activation="gelu",
                       out_dtype=jnp.bfloat16)
        h2 = linear_res_ln(inter, lp["wf"], lp["bf"],
                           res=h1, gamma=lp["ln2_g"], beta=lp["ln2_b"])
        return h2, None

    h, _ = jax.lax.scan(layer_step, h, params["layers"])

    # out2 = pooler(h[:, 0]);  nn.Dropout(0.3) -> identity at inference time.
    # TODO(synk): training-mode dropout (stochastic) not implemented.
    cls = h.reshape(B, S, H)[:, 0, :]                              # (B, H) bf16
    logits_pad = pooler_classifier(cls, params["wp"], params["bp"],
                                   params["w_cls_pad"], params["b_cls_pad"])
    return logits_pad[:, :1]                                       # (B, 1) f32


bert_forward_jit = jax.jit(bert_forward)


# ----------------------------------- main ------------------------------------ #

if __name__ == "__main__":
    key = jax.random.PRNGKey(0)
    k_param, k_ids, k_tt = jax.random.split(key, 3)

    B, S = 2, 8
    params = init_params(k_param, CFG)

    ids = jax.random.randint(k_ids, (B, S), 0, CFG["vocab"], dtype=jnp.int32)
    mask = jnp.ones((B, S), dtype=jnp.int32).at[1, 6:].set(0)   # pad tail of batch 1
    token_type_ids = jax.random.randint(k_tt, (B, S), 0, CFG["type_vocab"],
                                        dtype=jnp.int32)

    out = bert_forward_jit(params, ids, mask, token_type_ids)
    out = jax.block_until_ready(out)
    assert out.shape == (B, 1) and out.dtype == jnp.float32
    print("KERNEL_OK")
</pallas_src>

<mosaic_0001>
module attributes {stable_mosaic.version = 11 : i64} {
  func.func @_ln_kernel(%arg0: i32, %arg1: memref<16x32xf32, #tpu.memory_space<vmem>>, %arg2: memref<1x32xf32, #tpu.memory_space<vmem>>, %arg3: memref<1x32xf32, #tpu.memory_space<vmem>>, %arg4: memref<16x32xbf16, #tpu.memory_space<vmem>>) attributes {dimension_semantics = [#tpu.dimension_semantics<parallel>], iteration_bounds = array<i64: 1>, scalar_prefetch = 0 : i64, scratch_operands = 0 : i64, tpu.core_type = #tpu.core_type<tc>, window_params = [{transform_indices = @transform_0, window_bounds = array<i64: 16, 32>}, {pipeline_mode = #tpu.pipeline_mode<synchronous>, transform_indices = @transform_1, window_bounds = array<i64: 1, 32>}, {pipeline_mode = #tpu.pipeline_mode<synchronous>, transform_indices = @transform_2, window_bounds = array<i64: 1, 32>}, {transform_indices = @transform_3, window_bounds = array<i64: 16, 32>}]} {
    %c0 = arith.constant 0 : index
    %c0_0 = arith.constant 0 : index
    %0 = vector.load %arg1[%c0, %c0_0] : memref<16x32xf32, #tpu.memory_space<vmem>>, vector<16x32xf32>
    %cst = arith.constant dense<0.000000e+00> : vector<16xf32>
    %1 = vector.multi_reduction <add>, %0, %cst [1] : vector<16x32xf32> to vector<16xf32>
    %2 = vector.shape_cast %1 : vector<16xf32> to vector<16x1xf32>
    %cst_1 = arith.constant 3.200000e+01 : f32
    %3 = vector.broadcast %cst_1 : f32 to vector<16x1xf32>
    %4 = arith.divf %2, %3 : vector<16x1xf32>
    %5 = vector.broadcast %4 : vector<16x1xf32> to vector<16x32xf32>
    %6 = arith.subf %0, %5 : vector<16x32xf32>
    %7 = arith.mulf %6, %6 : vector<16x32xf32>
    %cst_2 = arith.constant dense<0.000000e+00> : vector<16xf32>
    %8 = vector.multi_reduction <add>, %7, %cst_2 [1] : vector<16x32xf32> to vector<16xf32>
    %9 = vector.shape_cast %8 : vector<16xf32> to vector<16x1xf32>
    %cst_3 = arith.constant 3.200000e+01 : f32
    %10 = vector.broadcast %cst_3 : f32 to vector<16x1xf32>
    %11 = arith.divf %9, %10 : vector<16x1xf32>
    %12 = vector.broadcast %4 : vector<16x1xf32> to vector<16x32xf32>
    %13 = arith.subf %0, %12 : vector<16x32xf32>
    %cst_4 = arith.constant 9.99999996E-13 : f32
    %14 = vector.broadcast %cst_4 : f32 to vector<16x1xf32>
    %15 = arith.addf %11, %14 : vector<16x1xf32>
    %16 = math.rsqrt %15 : vector<16x1xf32>
    %17 = vector.broadcast %16 : vector<16x1xf32> to vector<16x32xf32>
    %18 = arith.mulf %13, %17 : vector<16x32xf32>
    %c0_5 = arith.constant 0 : index
    %c0_6 = arith.constant 0 : index
    %19 = vector.load %arg2[%c0_5, %c0_6] : memref<1x32xf32, #tpu.memory_space<vmem>>, vector<1x32xf32>
    %20 = vector.broadcast %19 : vector<1x32xf32> to vector<16x32xf32>
    %21 = arith.mulf %18, %20 : vector<16x32xf32>
    %c0_7 = arith.constant 0 : index
    %c0_8 = arith.constant 0 : index
    %22 = vector.load %arg3[%c0_7, %c0_8] : memref<1x32xf32, #tpu.memory_space<vmem>>, vector<1x32xf32>
    %23 = vector.broadcast %22 : vector<1x32xf32> to vector<16x32xf32>
    %24 = arith.addf %21, %23 : vector<16x32xf32>
    %25 = arith.truncf %24 : vector<16x32xf32> to vector<16x32xbf16>
    %c0_9 = arith.constant 0 : index
    %c0_10 = arith.constant 0 : index
    %26 = vector.load %arg4[%c0_9, %c0_10] : memref<16x32xbf16, #tpu.memory_space<vmem>>, vector<16x32xbf16>
    tpu.vector_store %arg4[%c0_9, %c0_10], %25 {strides = array<i32>} : memref<16x32xbf16, #tpu.memory_space<vmem>>, vector<16x32xbf16>,
    return
  }
  func.func @transform_0(%arg0: i32) -> (i32, i32) {
    %c0_i32 = arith.constant 0 : i32
    %c0_i32_0 = arith.constant 0 : i32
    return %arg0, %c0_i32 : i32, i32
  }
  func.func @transform_1(%arg0: i32) -> (i32, i32) {
    %c0_i32 = arith.constant 0 : i32
    %c0_i32_0 = arith.constant 0 : i32
    %c0_i32_1 = arith.constant 0 : i32
    return %c0_i32, %c0_i32_0 : i32, i32
  }
  func.func @transform_2(%arg0: i32) -> (i32, i32) {
    %c0_i32 = arith.constant 0 : i32
    %c0_i32_0 = arith.constant 0 : i32
    %c0_i32_1 = arith.constant 0 : i32
    return %c0_i32, %c0_i32_0 : i32, i32
  }
  func.func @transform_3(%arg0: i32) -> (i32, i32) {
    %c0_i32 = arith.constant 0 : i32
    %c0_i32_0 = arith.constant 0 : i32
    return %arg0, %c0_i32 : i32, i32
  }
}

module attributes {stable_mosaic.version = 11 : i64} {
  func.func @_linear_kernel(%arg0: i32, %arg1: i32, %arg2: i32, %arg3: memref<16x32xbf16, #tpu.memory_space<vmem>>, %arg4: memref<32x96xbf16, #tpu.memory_space<vmem>>, %arg5: memref<1x96xf32, #tpu.memory_space<vmem>>, %arg6: memref<16x96xbf16, #tpu.memory_space<vmem>>, %arg7: memref<16x96xf32, #tpu.memory_space<vmem>>) attributes {dimension_semantics = [#tpu.dimension_semantics<parallel>, #tpu.dimension_semantics<parallel>, #tpu.dimension_semantics<arbitrary>], iteration_bounds = array<i64: 1, 1, 1>, scalar_prefetch = 0 : i64, scratch_operands = 1 : i64, tpu.core_type = #tpu.core_type<tc>, window_params = [{transform_indices = @transform_0, window_bounds = array<i64: 16, 32>}, {transform_indices = @transform_1, window_bounds = array<i64: 32, 96>}, {transform_indices = @transform_2, window_bounds = array<i64: 1, 96>}, {transform_indices = @transform_3, window_bounds = array<i64: 16, 96>}]} {
    %c0_i32 = arith.constant 0 : i32
    %0 = arith.cmpi eq, %arg2, %c0_i32 : i32
    %1 = arith.extui %0 : i1 to i32
    %c0_i32_0 = arith.constant 0 : i32
    %2 = arith.cmpi ne, %1, %c0_i32_0 : i32
    scf.if %2 {
      %cst_10 = arith.constant 0.000000e+00 : f32
      %12 = vector.broadcast %cst_10 : f32 to vector<16x96xf32>
      %c0_11 = arith.constant 0 : index
      %c0_12 = arith.constant 0 : index
      %13 = vector.load %arg7[%c0_11, %c0_12] : memref<16x96xf32, #tpu.memory_space<vmem>>, vector<16x96xf32>
      tpu.vector_store %arg7[%c0_11, %c0_12], %12 {strides = array<i32>} : memref<16x96xf32, #tpu.memory_space<vmem>>, vector<16x96xf32>,
    } else {
    }
    %c0 = arith.constant 0 : index
    %c0_1 = arith.constant 0 : index
    %3 = vector.load %arg7[%c0, %c0_1] : memref<16x96xf32, #tpu.memory_space<vmem>>, vector<16x96xf32>
    %c0_2 = arith.constant 0 : index
    %c0_3 = arith.constant 0 : index
    %4 = vector.load %arg3[%c0_2, %c0_3] : memref<16x32xbf16, #tpu.memory_space<vmem>>, vector<16x32xbf16>
    %c0_4 = arith.constant 0 : index
    %c0_5 = arith.constant 0 : index
    %5 = vector.load %arg4[%c0_4, %c0_5] : memref<32x96xbf16, #tpu.memory_space<vmem>>, vector<32x96xbf16>
    %cst = arith.constant dense<0.000000e+00> : vector<16x96xf32>
    %6 = tpu.matmul %4, %5, %cst {dimension_numbers = #tpu.dot_dimension_numbers<[1], [0], [0], [1], [0, 0, 1, 1], [], []>} : vector<16x32xbf16>, vector<32x96xbf16>, vector<16x96xf32> -> vector<16x96xf32>
    %7 = arith.addf %3, %6 : vector<16x96xf32>
    %c0_6 = arith.constant 0 : index
    %c0_7 = arith.constant 0 : index
    %8 = vector.load %arg7[%c0_6, %c0_7] : memref<16x96xf32, #tpu.memory_space<vmem>>, vector<16x96xf32>
    tpu.vector_store %arg7[%c0_6, %c0_7], %7 {strides = array<i32>} : memref<16x96xf32, #tpu.memory_space<vmem>>, vector<16x96xf32>,
    %c0_i32_8 = arith.constant 0 : i32
    %9 = arith.cmpi eq, %arg2, %c0_i32_8 : i32
    %10 = arith.extui %9 : i1 to i32
    %c0_i32_9 = arith.constant 0 : i32
    %11 = arith.cmpi ne, %10, %c0_i32_9 : i32
    scf.if %11 {
      %c0_10 = arith.constant 0 : index
      %c0_11 = arith.constant 0 : index
      %12 = vector.load %arg7[%c0_10, %c0_11] : memref<16x96xf32, #tpu.memory_space<vmem>>, vector<16x96xf32>
      %c0_12 = arith.constant 0 : index
      %c0_13 = arith.constant 0 : index
      %13 = vector.load %arg5[%c0_12, %c0_13] : memref<1x96xf32, #tpu.memory_space<vmem>>, vector<1x96xf32>
      %14 = vector.broadcast %13 : vector<1x96xf32> to vector<16x96xf32>
      %15 = arith.addf %12, %14 : vector<16x96xf32>
      %16 = arith.truncf %15 : vector<16x96xf32> to vector<16x96xbf16>
      %c0_14 = arith.constant 0 : index
      %c0_15 = arith.constant 0 : index
      %17 = vector.load %arg6[%c0_14, %c0_15] : memref<16x96xbf16, #tpu.memory_space<vmem>>, vector<16x96xbf16>
      tpu.vector_store %arg6[%c0_14, %c0_15], %16 {strides = array<i32>} : memref<16x96xbf16, #tpu.memory_space<vmem>>, vector<16x96xbf16>,
    } else {
    }
    return
  }
  func.func @transform_0(%arg0: i32, %arg1: i32, %arg2: i32) -> (i32, i32) {
    %c0_i32 = arith.constant 0 : i32
    return %arg0, %arg2 : i32, i32
  }
  func.func @transform_1(%arg0: i32, %arg1: i32, %arg2: i32) -> (i32, i32) {
    %c0_i32 = arith.constant 0 : i32
    return %arg2, %arg1 : i32, i32
  }
  func.func @transform_2(%arg0: i32, %arg1: i32, %arg2: i32) -> (i32, i32) {
    %c0_i32 = arith.constant 0 : i32
    %c0_i32_0 = arith.constant 0 : i32
    return %c0_i32, %arg1 : i32, i32
  }
  func.func @transform_3(%arg0: i32, %arg1: i32, %arg2: i32) -> (i32, i32) {
    %c0_i32 = arith.constant 0 : i32
    return %arg0, %arg1 : i32, i32
  }
}

module attributes {stable_mosaic.version = 11 : i64} {
  func.func @_attn_kernel(%arg0: i32, %arg1: i32, %arg2: memref<1x8x96xbf16, #tpu.memory_space<vmem>>, %arg3: memref<1x1x8xf32, #tpu.memory_space<vmem>>, %arg4: memref<1x8x32xbf16, #tpu.memory_space<vmem>>) attributes {dimension_semantics = [#tpu.dimension_semantics<parallel>, #tpu.dimension_semantics<parallel>], iteration_bounds = array<i64: 2, 1>, scalar_prefetch = 0 : i64, scratch_operands = 0 : i64, tpu.core_type = #tpu.core_type<tc>, window_params = [{transform_indices = @transform_0, window_bounds = array<i64: 1, 8, 96>}, {transform_indices = @transform_1, window_bounds = array<i64: 1, 1, 8>}, {transform_indices = @transform_2, window_bounds = array<i64: 1, 8, 32>}]} {
    %c0 = arith.constant 0 : index
    %c0_0 = arith.constant 0 : index
    %c0_1 = arith.constant 0 : index
    %0 = vector.load %arg2[%c0, %c0_0, %c0_1] : memref<1x8x96xbf16, #tpu.memory_space<vmem>>, vector<1x8x96xbf16>
    %1 = vector.shape_cast %0 : vector<1x8x96xbf16> to vector<8x96xbf16>
    %c0_2 = arith.constant 0 : index
    %c0_3 = arith.constant 0 : index
    %c0_4 = arith.constant 0 : index
    %2 = vector.load %arg3[%c0_2, %c0_3, %c0_4] : memref<1x1x8xf32, #tpu.memory_space<vmem>>, vector<1x1x8xf32>
    %3 = vector.shape_cast %2 : vector<1x1x8xf32> to vector<1x8xf32>
    %4 = vector.extract_strided_slice %1 {offsets = [0, 0], sizes = [8, 8], strides = [1, 1]} : vector<8x96xbf16> to vector<8x8xbf16>
    %5 = vector.extract_strided_slice %1 {offsets = [0, 32], sizes = [8, 8], strides = [1, 1]} : vector<8x96xbf16> to vector<8x8xbf16>
    %6 = vector.extract_strided_slice %1 {offsets = [0, 64], sizes = [8, 8], strides = [1, 1]} : vector<8x96xbf16> to vector<8x8xbf16>
    %7 = arith.extf %4 : vector<8x8xbf16> to vector<8x8xf32>
    %cst = arith.constant 0.353553385 : f32
    %8 = vector.broadcast %cst : f32 to vector<8x8xf32>
    %9 = arith.mulf %7, %8 : vector<8x8xf32>
    %10 = arith.truncf %9 : vector<8x8xf32> to vector<8x8xbf16>
    %cst_5 = arith.constant dense<0.000000e+00> : vector<8x8xf32>
    %11 = tpu.matmul %10, %5, %cst_5 {dimension_numbers = #tpu.dot_dimension_numbers<[1], [1], [0], [0], [0, 0, 1, 0], [], []>} : vector<8x8xbf16>, vector<8x8xbf16>, vector<8x8xf32> -> vector<8x8xf32>
    %12 = vector.broadcast %3 : vector<1x8xf32> to vector<8x8xf32>
    %13 = arith.addf %11, %12 : vector<8x8xf32>
    %cst_6 = arith.constant dense<0xFF800000> : vector<8xf32>
    %14 = vector.multi_reduction <maximumf>, %13, %cst_6 [1] : vector<8x8xf32> to vector<8xf32>
    %15 = vector.shape_cast %14 : vector<8xf32> to vector<8x1xf32>
    %16 = vector.broadcast %15 : vector<8x1xf32> to vector<8x8xf32>
    %17 = arith.subf %13, %16 : vector<8x8xf32>
    %18 = math.exp %17 : vector<8x8xf32>
    %cst_7 = arith.constant dense<0.000000e+00> : vector<8xf32>
    %19 = vector.multi_reduction <add>, %18, %cst_7 [1] : vector<8x8xf32> to vector<8xf32>
    %20 = vector.shape_cast %19 : vector<8xf32> to vector<8x1xf32>
    %21 = tpu.reciprocal %20 {approx = true} : vector<8x1xf32> -> vector<8x1xf32>
    %22 = vector.broadcast %21 : vector<8x1xf32> to vector<8x8xf32>
    %23 = arith.mulf %18, %22 : vector<8x8xf32>
    %24 = arith.truncf %23 : vector<8x8xf32> to vector<8x8xbf16>
    %cst_8 = arith.constant dense<0.000000e+00> : vector<8x8xf32>
    %25 = tpu.matmul %24, %6, %cst_8 {dimension_numbers = #tpu.dot_dimension_numbers<[1], [0], [0], [1], [0, 0, 1, 1], [], []>} : vector<8x8xbf16>, vector<8x8xbf16>, vector<8x8xf32> -> vector<8x8xf32>
    %26 = vector.extract_strided_slice %1 {offsets = [0, 8], sizes = [8, 8], strides = [1, 1]} : vector<8x96xbf16> to vector<8x8xbf16>
    %27 = vector.extract_strided_slice %1 {offsets = [0, 40], sizes = [8, 8], strides = [1, 1]} : vector<8x96xbf16> to vector<8x8xbf16>
    %28 = vector.extract_strided_slice %1 {offsets = [0, 72], sizes = [8, 8], strides = [1, 1]} : vector<8x96xbf16> to vector<8x8xbf16>
    %29 = arith.extf %26 : vector<8x8xbf16> to vector<8x8xf32>
    %cst_9 = arith.constant 0.353553385 : f32
    %30 = vector.broadcast %cst_9 : f32 to vector<8x8xf32>
    %31 = arith.mulf %29, %30 : vector<8x8xf32>
    %32 = arith.truncf %31 : vector<8x8xf32> to vector<8x8xbf16>
    %cst_10 = arith.constant dense<0.000000e+00> : vector<8x8xf32>
    %33 = tpu.matmul %32, %27, %cst_10 {dimension_numbers = #tpu.dot_dimension_numbers<[1], [1], [0], [0], [0, 0, 1, 0], [], []>} : vector<8x8xbf16>, vector<8x8xbf16>, vector<8x8xf32> -> vector<8x8xf32>
    %34 = vector.broadcast %3 : vector<1x8xf32> to vector<8x8xf32>
    %35 = arith.addf %33, %34 : vector<8x8xf32>
    %cst_11 = arith.constant dense<0xFF800000> : vector<8xf32>
    %36 = vector.multi_reduction <maximumf>, %35, %cst_11 [1] : vector<8x8xf32> to vector<8xf32>
    %37 = vector.shape_cast %36 : vector<8xf32> to vector<8x1xf32>
    %38 = vector.broadcast %37 : vector<8x1xf32> to vector<8x8xf32>
    %39 = arith.subf %35, %38 : vector<8x8xf32>
    %40 = math.exp %39 : vector<8x8xf32>
    %cst_12 = arith.constant dense<0.000000e+00> : vector<8xf32>
    %41 = vector.multi_reduction <add>, %40, %cst_12 [1] : vector<8x8xf32> to vector<8xf32>
    %42 = vector.shape_cast %41 : vector<8xf32> to vector<8x1xf32>
    %43 = tpu.reciprocal %42 {approx = true} : vector<8x1xf32> -> vector<8x1xf32>
    %44 = vector.broadcast %43 : vector<8x1xf32> to vector<8x8xf32>
    %45 = arith.mulf %40, %44 : vector<8x8xf32>
    %46 = arith.truncf %45 : vector<8x8xf32> to vector<8x8xbf16>
    %cst_13 = arith.constant dense<0.000000e+00> : vector<8x8xf32>
    %47 = tpu.matmul %46, %28, %cst_13 {dimension_numbers = #tpu.dot_dimension_numbers<[1], [0], [0], [1], [0, 0, 1, 1], [], []>} : vector<8x8xbf16>, vector<8x8xbf16>, vector<8x8xf32> -> vector<8x8xf32>
    %48 = vector.extract_strided_slice %1 {offsets = [0, 16], sizes = [8, 8], strides = [1, 1]} : vector<8x96xbf16> to vector<8x8xbf16>
    %49 = vector.extract_strided_slice %1 {offsets = [0, 48], sizes = [8, 8], strides = [1, 1]} : vector<8x96xbf16> to vector<8x8xbf16>
    %50 = vector.extract_strided_slice %1 {offsets = [0, 80], sizes = [8, 8], strides = [1, 1]} : vector<8x96xbf16> to vector<8x8xbf16>
    %51 = arith.extf %48 : vector<8x8xbf16> to vector<8x8xf32>
    %cst_14 = arith.constant 0.353553385 : f32
    %52 = vector.broadcast %cst_14 : f32 to vector<8x8xf32>
    %53 = arith.mulf %51, %52 : vector<8x8xf32>
    %54 = arith.truncf %53 : vector<8x8xf32> to vector<8x8xbf16>
    %cst_15 = arith.constant dense<0.000000e+00> : vector<8x8xf32>
    %55 = tpu.matmul %54, %49, %cst_15 {dimension_numbers = #tpu.dot_dimension_numbers<[1], [1], [0], [0], [0, 0, 1, 0], [], []>} : vector<8x8xbf16>, vector<8x8xbf16>, vector<8x8xf32> -> vector<8x8xf32>
    %56 = vector.broadcast %3 : vector<1x8xf32> to vector<8x8xf32>
    %57 = arith.addf %55, %56 : vector<8x8xf32>
    %cst_16 = arith.constant dense<0xFF800000> : vector<8xf32>
    %58 = vector.multi_reduction <maximumf>, %57, %cst_16 [1] : vector<8x8xf32> to vector<8xf32>
    %59 = vector.shape_cast %58 : vector<8xf32> to vector<8x1xf32>
    %60 = vector.broadcast %59 : vector<8x1xf32> to vector<8x8xf32>
    %61 = arith.subf %57, %60 : vector<8x8xf32>
    %62 = math.exp %61 : vector<8x8xf32>
    %cst_17 = arith.constant dense<0.000000e+00> : vector<8xf32>
    %63 = vector.multi_reduction <add>, %62, %cst_17 [1] : vector<8x8xf32> to vector<8xf32>
    %64 = vector.shape_cast %63 : vector<8xf32> to vector<8x1xf32>
    %65 = tpu.reciprocal %64 {approx = true} : vector<8x1xf32> -> vector<8x1xf32>
    %66 = vector.broadcast %65 : vector<8x1xf32> to vector<8x8xf32>
    %67 = arith.mulf %62, %66 : vector<8x8xf32>
    %68 = arith.truncf %67 : vector<8x8xf32> to vector<8x8xbf16>
    %cst_18 = arith.constant dense<0.000000e+00> : vector<8x8xf32>
    %69 = tpu.matmul %68, %50, %cst_18 {dimension_numbers = #tpu.dot_dimension_numbers<[1], [0], [0], [1], [0, 0, 1, 1], [], []>} : vector<8x8xbf16>, vector<8x8xbf16>, vector<8x8xf32> -> vector<8x8xf32>
    %70 = vector.extract_strided_slice %1 {offsets = [0, 24], sizes = [8, 8], strides = [1, 1]} : vector<8x96xbf16> to vector<8x8xbf16>
    %71 = vector.extract_strided_slice %1 {offsets = [0, 56], sizes = [8, 8], strides = [1, 1]} : vector<8x96xbf16> to vector<8x8xbf16>
    %72 = vector.extract_strided_slice %1 {offsets = [0, 88], sizes = [8, 8], strides = [1, 1]} : vector<8x96xbf16> to vector<8x8xbf16>
    %73 = arith.extf %70 : vector<8x8xbf16> to vector<8x8xf32>
    %cst_19 = arith.constant 0.353553385 : f32
    %74 = vector.broadcast %cst_19 : f32 to vector<8x8xf32>
    %75 = arith.mulf %73, %74 : vector<8x8xf32>
    %76 = arith.truncf %75 : vector<8x8xf32> to vector<8x8xbf16>
    %cst_20 = arith.constant dense<0.000000e+00> : vector<8x8xf32>
    %77 = tpu.matmul %76, %71, %cst_20 {dimension_numbers = #tpu.dot_dimension_numbers<[1], [1], [0], [0], [0, 0, 1, 0], [], []>} : vector<8x8xbf16>, vector<8x8xbf16>, vector<8x8xf32> -> vector<8x8xf32>
    %78 = vector.broadcast %3 : vector<1x8xf32> to vector<8x8xf32>
    %79 = arith.addf %77, %78 : vector<8x8xf32>
    %cst_21 = arith.constant dense<0xFF800000> : vector<8xf32>
    %80 = vector.multi_reduction <maximumf>, %79, %cst_21 [1] : vector<8x8xf32> to vector<8xf32>
    %81 = vector.shape_cast %80 : vector<8xf32> to vector<8x1xf32>
    %82 = vector.broadcast %81 : vector<8x1xf32> to vector<8x8xf32>
    %83 = arith.subf %79, %82 : vector<8x8xf32>
    %84 = math.exp %83 : vector<8x8xf32>
    %cst_22 = arith.constant dense<0.000000e+00> : vector<8xf32>
    %85 = vector.multi_reduction <add>, %84, %cst_22 [1] : vector<8x8xf32> to vector<8xf32>
    %86 = vector.shape_cast %85 : vector<8xf32> to vector<8x1xf32>
    %87 = tpu.reciprocal %86 {approx = true} : vector<8x1xf32> -> vector<8x1xf32>
    %88 = vector.broadcast %87 : vector<8x1xf32> to vector<8x8xf32>
    %89 = arith.mulf %84, %88 : vector<8x8xf32>
    %90 = arith.truncf %89 : vector<8x8xf32> to vector<8x8xbf16>
    %cst_23 = arith.constant dense<0.000000e+00> : vector<8x8xf32>
    %91 = tpu.matmul %90, %72, %cst_23 {dimension_numbers = #tpu.dot_dimension_numbers<[1], [0], [0], [1], [0, 0, 1, 1], [], []>} : vector<8x8xbf16>, vector<8x8xbf16>, vector<8x8xf32> -> vector<8x8xf32>
    %92 = tpu.concatenate %25, %47, %69, %91 in 1 : vector<8x8xf32>, vector<8x8xf32>, vector<8x8xf32>, vector<8x8xf32> -> vector<8x32xf32>
    %93 = arith.truncf %92 : vector<8x32xf32> to vector<8x32xbf16>
    %c0_24 = arith.constant 0 : index
    %c0_25 = arith.constant 0 : index
    %c0_26 = arith.constant 0 : index
    %94 = vector.load %arg4[%c0_24, %c0_25, %c0_26] : memref<1x8x32xbf16, #tpu.memory_space<vmem>>, vector<1x8x32xbf16>
    %95 = vector.shape_cast %94 : vector<1x8x32xbf16> to vector<8x32xbf16>
    %96 = vector.shape_cast %93 : vector<8x32xbf16> to vector<1x8x32xbf16>
    tpu.vector_store %arg4[%c0_24, %c0_25, %c0_26], %96 {strides = array<i32>} : memref<1x8x32xbf16, #tpu.memory_space<vmem>>, vector<1x8x32xbf16>,
    return
  }
  func.func @transform_0(%arg0: i32, %arg1: i32) -> (i32, i32, i32) {
    %c0_i32 = arith.constant 0 : i32
    %c0_i32_0 = arith.constant 0 : i32
    return %arg0, %c0_i32, %arg1 : i32, i32, i32
  }
  func.func @transform_1(%arg0: i32, %arg1: i32) -> (i32, i32, i32) {
    %c0_i32 = arith.constant 0 : i32
    %c0_i32_0 = arith.constant 0 : i32
    %c0_i32_1 = arith.constant 0 : i32
    return %arg0, %c0_i32, %c0_i32_0 : i32, i32, i32
  }
  func.func @transform_2(%arg0: i32, %arg1: i32) -> (i32, i32, i32) {
    %c0_i32 = arith.constant 0 : i32
    %c0_i32_0 = arith.constant 0 : i32
    return %arg0, %c0_i32, %arg1 : i32, i32, i32
  }
}

module attributes {stable_mosaic.version = 11 : i64} {
  func.func @_linear_res_ln_kernel(%arg0: i32, %arg1: i32, %arg2: memref<16x32xbf16, #tpu.memory_space<vmem>>, %arg3: memref<32x32xbf16, #tpu.memory_space<vmem>>, %arg4: memref<1x32xf32, #tpu.memory_space<vmem>>, %arg5: memref<16x32xbf16, #tpu.memory_space<vmem>>, %arg6: memref<1x32xf32, #tpu.memory_space<vmem>>, %arg7: memref<1x32xf32, #tpu.memory_space<vmem>>, %arg8: memref<16x32xbf16, #tpu.memory_space<vmem>>, %arg9: memref<16x32xf32, #tpu.memory_space<vmem>>) attributes {dimension_semantics = [#tpu.dimension_semantics<parallel>, #tpu.dimension_semantics<arbitrary>], iteration_bounds = array<i64: 1, 1>, scalar_prefetch = 0 : i64, scratch_operands = 1 : i64, tpu.core_type = #tpu.core_type<tc>, window_params = [{transform_indices = @transform_0, window_bounds = array<i64: 16, 32>}, {transform_indices = @transform_1, window_bounds = array<i64: 32, 32>}, {pipeline_mode = #tpu.pipeline_mode<synchronous>, transform_indices = @transform_2, window_bounds = array<i64: 1, 32>}, {transform_indices = @transform_3, window_bounds = array<i64: 16, 32>}, {pipeline_mode = #tpu.pipeline_mode<synchronous>, transform_indices = @transform_4, window_bounds = array<i64: 1, 32>}, {pipeline_mode = #tpu.pipeline_mode<synchronous>, transform_indices = @transform_5, window_bounds = array<i64: 1, 32>}, {transform_indices = @transform_6, window_bounds = array<i64: 16, 32>}]} {
    %c0_i32 = arith.constant 0 : i32
    %0 = arith.cmpi eq, %arg1, %c0_i32 : i32
    %1 = arith.extui %0 : i1 to i32
    %c0_i32_0 = arith.constant 0 : i32
    %2 = arith.cmpi ne, %1, %c0_i32_0 : i32
    scf.if %2 {
      %cst_10 = arith.constant 0.000000e+00 : f32
      %12 = vector.broadcast %cst_10 : f32 to vector<16x32xf32>
      %c0_11 = arith.constant 0 : index
      %c0_12 = arith.constant 0 : index
      %13 = vector.load %arg9[%c0_11, %c0_12] : memref<16x32xf32, #tpu.memory_space<vmem>>, vector<16x32xf32>
      tpu.vector_store %arg9[%c0_11, %c0_12], %12 {strides = array<i32>} : memref<16x32xf32, #tpu.memory_space<vmem>>, vector<16x32xf32>,
    } else {
    }
    %c0 = arith.constant 0 : index
    %c0_1 = arith.constant 0 : index
    %3 = vector.load %arg9[%c0, %c0_1] : memref<16x32xf32, #tpu.memory_space<vmem>>, vector<16x32xf32>
    %c0_2 = arith.constant 0 : index
    %c0_3 = arith.constant 0 : index
    %4 = vector.load %arg2[%c0_2, %c0_3] : memref<16x32xbf16, #tpu.memory_space<vmem>>, vector<16x32xbf16>
    %c0_4 = arith.constant 0 : index
    %c0_5 = arith.constant 0 : index
    %5 = vector.load %arg3[%c0_4, %c0_5] : memref<32x32xbf16, #tpu.memory_space<vmem>>, vector<32x32xbf16>
    %cst = arith.constant dense<0.000000e+00> : vector<16x32xf32>
    %6 = tpu.matmul %4, %5, %cst {dimension_numbers = #tpu.dot_dimension_numbers<[1], [0], [0], [1], [0, 0, 1, 1], [], []>} : vector<16x32xbf16>, vector<32x32xbf16>, vector<16x32xf32> -> vector<16x32xf32>
    %7 = arith.addf %3, %6 : vector<16x32xf32>
    %c0_6 = arith.constant 0 : index
    %c0_7 = arith.constant 0 : index
    %8 = vector.load %arg9[%c0_6, %c0_7] : memref<16x32xf32, #tpu.memory_space<vmem>>, vector<16x32xf32>
    tpu.vector_store %arg9[%c0_6, %c0_7], %7 {strides = array<i32>} : memref<16x32xf32, #tpu.memory_space<vmem>>, vector<16x32xf32>,
    %c0_i32_8 = arith.constant 0 : i32
    %9 = arith.cmpi eq, %arg1, %c0_i32_8 : i32
    %10 = arith.extui %9 : i1 to i32
    %c0_i32_9 = arith.constant 0 : i32
    %11 = arith.cmpi ne, %10, %c0_i32_9 : i32
    scf.if %11 {
      %c0_10 = arith.constant 0 : index
      %c0_11 = arith.constant 0 : index
      %12 = vector.load %arg9[%c0_10, %c0_11] : memref<16x32xf32, #tpu.memory_space<vmem>>, vector<16x32xf32>
      %c0_12 = arith.constant 0 : index
      %c0_13 = arith.constant 0 : index
      %13 = vector.load %arg4[%c0_12, %c0_13] : memref<1x32xf32, #tpu.memory_space<vmem>>, vector<1x32xf32>
      %14 = vector.broadcast %13 : vector<1x32xf32> to vector<16x32xf32>
      %15 = arith.addf %12, %14 : vector<16x32xf32>
      %c0_14 = arith.constant 0 : index
      %c0_15 = arith.constant 0 : index
      %16 = vector.load %arg5[%c0_14, %c0_15] : memref<16x32xbf16, #tpu.memory_space<vmem>>, vector<16x32xbf16>
      %17 = arith.extf %16 : vector<16x32xbf16> to vector<16x32xf32>
      %18 = arith.addf %15, %17 : vector<16x32xf32>
      %cst_16 = arith.constant dense<0.000000e+00> : vector<16xf32>
      %19 = vector.multi_reduction <add>, %18, %cst_16 [1] : vector<16x32xf32> to vector<16xf32>
      %20 = vector.shape_cast %19 : vector<16xf32> to vector<16x1xf32>
      %cst_17 = arith.constant 3.200000e+01 : f32
      %21 = vector.broadcast %cst_17 : f32 to vector<16x1xf32>
      %22 = arith.divf %20, %21 : vector<16x1xf32>
      %23 = vector.broadcast %22 : vector<16x1xf32> to vector<16x32xf32>
      %24 = arith.subf %18, %23 : vector<16x32xf32>
      %25 = arith.mulf %24, %24 : vector<16x32xf32>
      %cst_18 = arith.constant dense<0.000000e+00> : vector<16xf32>
      %26 = vector.multi_reduction <add>, %25, %cst_18 [1] : vector<16x32xf32> to vector<16xf32>
      %27 = vector.shape_cast %26 : vector<16xf32> to vector<16x1xf32>
      %cst_19 = arith.constant 3.200000e+01 : f32
      %28 = vector.broadcast %cst_19 : f32 to vector<16x1xf32>
      %29 = arith.divf %27, %28 : vector<16x1xf32>
      %30 = vector.broadcast %22 : vector<16x1xf32> to vector<16x32xf32>
      %31 = arith.subf %18, %30 : vector<16x32xf32>
      %cst_20 = arith.constant 9.99999996E-13 : f32
      %32 = vector.broadcast %cst_20 : f32 to vector<16x1xf32>
      %33 = arith.addf %29, %32 : vector<16x1xf32>
      %34 = math.rsqrt %33 : vector<16x1xf32>
      %35 = vector.broadcast %34 : vector<16x1xf32> to vector<16x32xf32>
      %36 = arith.mulf %31, %35 : vector<16x32xf32>
      %c0_21 = arith.constant 0 : index
      %c0_22 = arith.constant 0 : index
      %37 = vector.load %arg6[%c0_21, %c0_22] : memref<1x32xf32, #tpu.memory_space<vmem>>, vector<1x32xf32>
      %38 = vector.broadcast %37 : vector<1x32xf32> to vector<16x32xf32>
      %39 = arith.mulf %36, %38 : vector<16x32xf32>
      %c0_23 = arith.constant 0 : index
      %c0_24 = arith.constant 0 : index
      %40 = vector.load %arg7[%c0_23, %c0_24] : memref<1x32xf32, #tpu.memory_space<vmem>>, vector<1x32xf32>
      %41 = vector.broadcast %40 : vector<1x32xf32> to vector<16x32xf32>
      %42 = arith.addf %39, %41 : vector<16x32xf32>
      %43 = arith.truncf %42 : vector<16x32xf32> to vector<16x32xbf16>
      %c0_25 = arith.constant 0 : index
      %c0_26 = arith.constant 0 : index
      %44 = vector.load %arg8[%c0_25, %c0_26] : memref<16x32xbf16, #tpu.memory_space<vmem>>, vector<16x32xbf16>
      tpu.vector_store %arg8[%c0_25, %c0_26], %43 {strides = array<i32>} : memref<16x32xbf16, #tpu.memory_space<vmem>>, vector<16x32xbf16>,
    } else {
    }
    return
  }
  func.func @transform_0(%arg0: i32, %arg1: i32) -> (i32, i32) {
    %c0_i32 = arith.constant 0 : i32
    return %arg0, %arg1 : i32, i32
  }
  func.func @transform_1(%arg0: i32, %arg1: i32) -> (i32, i32) {
    %c0_i32 = arith.constant 0 : i32
    %c0_i32_0 = arith.constant 0 : i32
    return %arg1, %c0_i32 : i32, i32
  }
  func.func @transform_2(%arg0: i32, %arg1: i32) -> (i32, i32) {
    %c0_i32 = arith.constant 0 : i32
    %c0_i32_0 = arith.constant 0 : i32
    %c0_i32_1 = arith.constant 0 : i32
    return %c0_i32, %c0_i32_0 : i32, i32
  }
  func.func @transform_3(%arg0: i32, %arg1: i32) -> (i32, i32) {
    %c0_i32 = arith.constant 0 : i32
    %c0_i32_0 = arith.constant 0 : i32
    return %arg0, %c0_i32 : i32, i32
  }
  func.func @transform_4(%arg0: i32, %arg1: i32) -> (i32, i32) {
    %c0_i32 = arith.constant 0 : i32
    %c0_i32_0 = arith.constant 0 : i32
    %c0_i32_1 = arith.constant 0 : i32
    return %c0_i32, %c0_i32_0 : i32, i32
  }
  func.func @transform_5(%arg0: i32, %arg1: i32) -> (i32, i32) {
    %c0_i32 = arith.constant 0 : i32
    %c0_i32_0 = arith.constant 0 : i32
    %c0_i32_1 = arith.constant 0 : i32
    return %c0_i32, %c0_i32_0 : i32, i32
  }
  func.func @transform_6(%arg0: i32, %arg1: i32) -> (i32, i32) {
    %c0_i32 = arith.constant 0 : i32
    %c0_i32_0 = arith.constant 0 : i32
    return %arg0, %c0_i32 : i32, i32
  }
}

module attributes {stable_mosaic.version = 11 : i64} {
  func.func @_linear_kernel(%arg0: i32, %arg1: i32, %arg2: i32, %arg3: memref<16x32xbf16, #tpu.memory_space<vmem>>, %arg4: memref<32x64xbf16, #tpu.memory_space<vmem>>, %arg5: memref<1x64xf32, #tpu.memory_space<vmem>>, %arg6: memref<16x64xbf16, #tpu.memory_space<vmem>>, %arg7: memref<16x64xf32, #tpu.memory_space<vmem>>) attributes {dimension_semantics = [#tpu.dimension_semantics<parallel>, #tpu.dimension_semantics<parallel>, #tpu.dimension_semantics<arbitrary>], iteration_bounds = array<i64: 1, 1, 1>, scalar_prefetch = 0 : i64, scratch_operands = 1 : i64, tpu.core_type = #tpu.core_type<tc>, window_params = [{transform_indices = @transform_0, window_bounds = array<i64: 16, 32>}, {transform_indices = @transform_1, window_bounds = array<i64: 32, 64>}, {transform_indices = @transform_2, window_bounds = array<i64: 1, 64>}, {transform_indices = @transform_3, window_bounds = array<i64: 16, 64>}]} {
    %c0_i32 = arith.constant 0 : i32
    %0 = arith.cmpi eq, %arg2, %c0_i32 : i32
    %1 = arith.extui %0 : i1 to i32
    %c0_i32_0 = arith.constant 0 : i32
    %2 = arith.cmpi ne, %1, %c0_i32_0 : i32
    scf.if %2 {
      %cst_10 = arith.constant 0.000000e+00 : f32
      %12 = vector.broadcast %cst_10 : f32 to vector<16x64xf32>
      %c0_11 = arith.constant 0 : index
      %c0_12 = arith.constant 0 : index
      %13 = vector.load %arg7[%c0_11, %c0_12] : memref<16x64xf32, #tpu.memory_space<vmem>>, vector<16x64xf32>
      tpu.vector_store %arg7[%c0_11, %c0_12], %12 {strides = array<i32>} : memref<16x64xf32, #tpu.memory_space<vmem>>, vector<16x64xf32>,
    } else {
    }
    %c0 = arith.constant 0 : index
    %c0_1 = arith.constant 0 : index
    %3 = vector.load %arg7[%c0, %c0_1] : memref<16x64xf32, #tpu.memory_space<vmem>>, vector<16x64xf32>
    %c0_2 = arith.constant 0 : index
    %c0_3 = arith.constant 0 : index
    %4 = vector.load %arg3[%c0_2, %c0_3] : memref<16x32xbf16, #tpu.memory_space<vmem>>, vector<16x32xbf16>
    %c0_4 = arith.constant 0 : index
    %c0_5 = arith.constant 0 : index
    %5 = vector.load %arg4[%c0_4, %c0_5] : memref<32x64xbf16, #tpu.memory_space<vmem>>, vector<32x64xbf16>
    %cst = arith.constant dense<0.000000e+00> : vector<16x64xf32>
    %6 = tpu.matmul %4, %5, %cst {dimension_numbers = #tpu.dot_dimension_numbers<[1], [0], [0], [1], [0, 0, 1, 1], [], []>} : vector<16x32xbf16>, vector<32x64xbf16>, vector<16x64xf32> -> vector<16x64xf32>
    %7 = arith.addf %3, %6 : vector<16x64xf32>
    %c0_6 = arith.constant 0 : index
    %c0_7 = arith.constant 0 : index
    %8 = vector.load %arg7[%c0_6, %c0_7] : memref<16x64xf32, #tpu.memory_space<vmem>>, vector<16x64xf32>
    tpu.vector_store %arg7[%c0_6, %c0_7], %7 {strides = array<i32>} : memref<16x64xf32, #tpu.memory_space<vmem>>, vector<16x64xf32>,
    %c0_i32_8 = arith.constant 0 : i32
    %9 = arith.cmpi eq, %arg2, %c0_i32_8 : i32
    %10 = arith.extui %9 : i1 to i32
    %c0_i32_9 = arith.constant 0 : i32
    %11 = arith.cmpi ne, %10, %c0_i32_9 : i32
    scf.if %11 {
      %c0_10 = arith.constant 0 : index
      %c0_11 = arith.constant 0 : index
      %12 = vector.load %arg7[%c0_10, %c0_11] : memref<16x64xf32, #tpu.memory_space<vmem>>, vector<16x64xf32>
      %c0_12 = arith.constant 0 : index
      %c0_13 = arith.constant 0 : index
      %13 = vector.load %arg5[%c0_12, %c0_13] : memref<1x64xf32, #tpu.memory_space<vmem>>, vector<1x64xf32>
      %14 = vector.broadcast %13 : vector<1x64xf32> to vector<16x64xf32>
      %15 = arith.addf %12, %14 : vector<16x64xf32>
      %16 = arith.mulf %15, %15 : vector<16x64xf32>
      %17 = arith.mulf %15, %16 : vector<16x64xf32>
      %cst_14 = arith.constant 4.471500e-02 : f32
      %18 = vector.broadcast %cst_14 : f32 to vector<16x64xf32>
      %19 = arith.mulf %18, %17 : vector<16x64xf32>
      %20 = arith.addf %15, %19 : vector<16x64xf32>
      %cst_15 = arith.constant 0.797884583 : f32
      %21 = vector.broadcast %cst_15 : f32 to vector<16x64xf32>
      %22 = arith.mulf %21, %20 : vector<16x64xf32>
      %23 = math.tanh %22 : vector<16x64xf32>
      %cst_16 = arith.constant 1.000000e+00 : f32
      %24 = vector.broadcast %cst_16 : f32 to vector<16x64xf32>
      %25 = arith.addf %24, %23 : vector<16x64xf32>
      %cst_17 = arith.constant 5.000000e-01 : f32
      %26 = vector.broadcast %cst_17 : f32 to vector<16x64xf32>
      %27 = arith.mulf %26, %25 : vector<16x64xf32>
      %28 = arith.mulf %15, %27 : vector<16x64xf32>
      %29 = arith.truncf %28 : vector<16x64xf32> to vector<16x64xbf16>
      %c0_18 = arith.constant 0 : index
      %c0_19 = arith.constant 0 : index
      %30 = vector.load %arg6[%c0_18, %c0_19] : memref<16x64xbf16, #tpu.memory_space<vmem>>, vector<16x64xbf16>
      tpu.vector_store %arg6[%c0_18, %c0_19], %29 {strides = array<i32>} : memref<16x64xbf16, #tpu.memory_space<vmem>>, vector<16x64xbf16>,
    } else {
    }
    return
  }
  func.func @transform_0(%arg0: i32, %arg1: i32, %arg2: i32) -> (i32, i32) {
    %c0_i32 = arith.constant 0 : i32
    return %arg0, %arg2 : i32, i32
  }
  func.func @transform_1(%arg0: i32, %arg1: i32, %arg2: i32) -> (i32, i32) {
    %c0_i32 = arith.constant 0 : i32
    return %arg2, %arg1 : i32, i32
  }
  func.func @transform_2(%arg0: i32, %arg1: i32, %arg2: i32) -> (i32, i32) {
    %c0_i32 = arith.constant 0 : i32
    %c0_i32_0 = arith.constant 0 : i32
    return %c0_i32, %arg1 : i32, i32
  }
  func.func @transform_3(%arg0: i32, %arg1: i32, %arg2: i32) -> (i32, i32) {
    %c0_i32 = arith.constant 0 : i32
    return %arg0, %arg1 : i32, i32
  }
}

module attributes {stable_mosaic.version = 11 : i64} {
  func.func @_linear_res_ln_kernel(%arg0: i32, %arg1: i32, %arg2: memref<16x64xbf16, #tpu.memory_space<vmem>>, %arg3: memref<64x32xbf16, #tpu.memory_space<vmem>>, %arg4: memref<1x32xf32, #tpu.memory_space<vmem>>, %arg5: memref<16x32xbf16, #tpu.memory_space<vmem>>, %arg6: memref<1x32xf32, #tpu.memory_space<vmem>>, %arg7: memref<1x32xf32, #tpu.memory_space<vmem>>, %arg8: memref<16x32xbf16, #tpu.memory_space<vmem>>, %arg9: memref<16x32xf32, #tpu.memory_space<vmem>>) attributes {dimension_semantics = [#tpu.dimension_semantics<parallel>, #tpu.dimension_semantics<arbitrary>], iteration_bounds = array<i64: 1, 1>, scalar_prefetch = 0 : i64, scratch_operands = 1 : i64, tpu.core_type = #tpu.core_type<tc>, window_params = [{transform_indices = @transform_0, window_bounds = array<i64: 16, 64>}, {transform_indices = @transform_1, window_bounds = array<i64: 64, 32>}, {pipeline_mode = #tpu.pipeline_mode<synchronous>, transform_indices = @transform_2, window_bounds = array<i64: 1, 32>}, {transform_indices = @transform_3, window_bounds = array<i64: 16, 32>}, {pipeline_mode = #tpu.pipeline_mode<synchronous>, transform_indices = @transform_4, window_bounds = array<i64: 1, 32>}, {pipeline_mode = #tpu.pipeline_mode<synchronous>, transform_indices = @transform_5, window_bounds = array<i64: 1, 32>}, {transform_indices = @transform_6, window_bounds = array<i64: 16, 32>}]} {
    %c0_i32 = arith.constant 0 : i32
    %0 = arith.cmpi eq, %arg1, %c0_i32 : i32
    %1 = arith.extui %0 : i1 to i32
    %c0_i32_0 = arith.constant 0 : i32
    %2 = arith.cmpi ne, %1, %c0_i32_0 : i32
    scf.if %2 {
      %cst_10 = arith.constant 0.000000e+00 : f32
      %12 = vector.broadcast %cst_10 : f32 to vector<16x32xf32>
      %c0_11 = arith.constant 0 : index
      %c0_12 = arith.constant 0 : index
      %13 = vector.load %arg9[%c0_11, %c0_12] : memref<16x32xf32, #tpu.memory_space<vmem>>, vector<16x32xf32>
      tpu.vector_store %arg9[%c0_11, %c0_12], %12 {strides = array<i32>} : memref<16x32xf32, #tpu.memory_space<vmem>>, vector<16x32xf32>,
    } else {
    }
    %c0 = arith.constant 0 : index
    %c0_1 = arith.constant 0 : index
    %3 = vector.load %arg9[%c0, %c0_1] : memref<16x32xf32, #tpu.memory_space<vmem>>, vector<16x32xf32>
    %c0_2 = arith.constant 0 : index
    %c0_3 = arith.constant 0 : index
    %4 = vector.load %arg2[%c0_2, %c0_3] : memref<16x64xbf16, #tpu.memory_space<vmem>>, vector<16x64xbf16>
    %c0_4 = arith.constant 0 : index
    %c0_5 = arith.constant 0 : index
    %5 = vector.load %arg3[%c0_4, %c0_5] : memref<64x32xbf16, #tpu.memory_space<vmem>>, vector<64x32xbf16>
    %cst = arith.constant dense<0.000000e+00> : vector<16x32xf32>
    %6 = tpu.matmul %4, %5, %cst {dimension_numbers = #tpu.dot_dimension_numbers<[1], [0], [0], [1], [0, 0, 1, 1], [], []>} : vector<16x64xbf16>, vector<64x32xbf16>, vector<16x32xf32> -> vector<16x32xf32>
    %7 = arith.addf %3, %6 : vector<16x32xf32>
    %c0_6 = arith.constant 0 : index
    %c0_7 = arith.constant 0 : index
    %8 = vector.load %arg9[%c0_6, %c0_7] : memref<16x32xf32, #tpu.memory_space<vmem>>, vector<16x32xf32>
    tpu.vector_store %arg9[%c0_6, %c0_7], %7 {strides = array<i32>} : memref<16x32xf32, #tpu.memory_space<vmem>>, vector<16x32xf32>,
    %c0_i32_8 = arith.constant 0 : i32
    %9 = arith.cmpi eq, %arg1, %c0_i32_8 : i32
    %10 = arith.extui %9 : i1 to i32
    %c0_i32_9 = arith.constant 0 : i32
    %11 = arith.cmpi ne, %10, %c0_i32_9 : i32
    scf.if %11 {
      %c0_10 = arith.constant 0 : index
      %c0_11 = arith.constant 0 : index
      %12 = vector.load %arg9[%c0_10, %c0_11] : memref<16x32xf32, #tpu.memory_space<vmem>>, vector<16x32xf32>
      %c0_12 = arith.constant 0 : index
      %c0_13 = arith.constant 0 : index
      %13 = vector.load %arg4[%c0_12, %c0_13] : memref<1x32xf32, #tpu.memory_space<vmem>>, vector<1x32xf32>
      %14 = vector.broadcast %13 : vector<1x32xf32> to vector<16x32xf32>
      %15 = arith.addf %12, %14 : vector<16x32xf32>
      %c0_14 = arith.constant 0 : index
      %c0_15 = arith.constant 0 : index
      %16 = vector.load %arg5[%c0_14, %c0_15] : memref<16x32xbf16, #tpu.memory_space<vmem>>, vector<16x32xbf16>
      %17 = arith.extf %16 : vector<16x32xbf16> to vector<16x32xf32>
      %18 = arith.addf %15, %17 : vector<16x32xf32>
      %cst_16 = arith.constant dense<0.000000e+00> : vector<16xf32>
      %19 = vector.multi_reduction <add>, %18, %cst_16 [1] : vector<16x32xf32> to vector<16xf32>
      %20 = vector.shape_cast %19 : vector<16xf32> to vector<16x1xf32>
      %cst_17 = arith.constant 3.200000e+01 : f32
      %21 = vector.broadcast %cst_17 : f32 to vector<16x1xf32>
      %22 = arith.divf %20, %21 : vector<16x1xf32>
      %23 = vector.broadcast %22 : vector<16x1xf32> to vector<16x32xf32>
      %24 = arith.subf %18, %23 : vector<16x32xf32>
      %25 = arith.mulf %24, %24 : vector<16x32xf32>
      %cst_18 = arith.constant dense<0.000000e+00> : vector<16xf32>
      %26 = vector.multi_reduction <add>, %25, %cst_18 [1] : vector<16x32xf32> to vector<16xf32>
      %27 = vector.shape_cast %26 : vector<16xf32> to vector<16x1xf32>
      %cst_19 = arith.constant 3.200000e+01 : f32
      %28 = vector.broadcast %cst_19 : f32 to vector<16x1xf32>
      %29 = arith.divf %27, %28 : vector<16x1xf32>
      %30 = vector.broadcast %22 : vector<16x1xf32> to vector<16x32xf32>
      %31 = arith.subf %18, %30 : vector<16x32xf32>
      %cst_20 = arith.constant 9.99999996E-13 : f32
      %32 = vector.broadcast %cst_20 : f32 to vector<16x1xf32>
      %33 = arith.addf %29, %32 : vector<16x1xf32>
      %34 = math.rsqrt %33 : vector<16x1xf32>
      %35 = vector.broadcast %34 : vector<16x1xf32> to vector<16x32xf32>
      %36 = arith.mulf %31, %35 : vector<16x32xf32>
      %c0_21 = arith.constant 0 : index
      %c0_22 = arith.constant 0 : index
      %37 = vector.load %arg6[%c0_21, %c0_22] : memref<1x32xf32, #tpu.memory_space<vmem>>, vector<1x32xf32>
      %38 = vector.broadcast %37 : vector<1x32xf32> to vector<16x32xf32>
      %39 = arith.mulf %36, %38 : vector<16x32xf32>
      %c0_23 = arith.constant 0 : index
      %c0_24 = arith.constant 0 : index
      %40 = vector.load %arg7[%c0_23, %c0_24] : memref<1x32xf32, #tpu.memory_space<vmem>>, vector<1x32xf32>
      %41 = vector.broadcast %40 : vector<1x32xf32> to vector<16x32xf32>
      %42 = arith.addf %39, %41 : vector<16x32xf32>
      %43 = arith.truncf %42 : vector<16x32xf32> to vector<16x32xbf16>
      %c0_25 = arith.constant 0 : index
      %c0_26 = arith.constant 0 : index
      %44 = vector.load %arg8[%c0_25, %c0_26] : memref<16x32xbf16, #tpu.memory_space<vmem>>, vector<16x32xbf16>
      tpu.vector_store %arg8[%c0_25, %c0_26], %43 {strides = array<i32>} : memref<16x32xbf16, #tpu.memory_space<vmem>>, vector<16x32xbf16>,
    } else {
    }
    return
  }
  func.func @transform_0(%arg0: i32, %arg1: i32) -> (i32, i32) {
    %c0_i32 = arith.constant 0 : i32
    return %arg0, %arg1 : i32, i32
  }
  func.func @transform_1(%arg0: i32, %arg1: i32) -> (i32, i32) {
    %c0_i32 = arith.constant 0 : i32
    %c0_i32_0 = arith.constant 0 : i32
    return %arg1, %c0_i32 : i32, i32
  }
  func.func @transform_2(%arg0: i32, %arg1: i32) -> (i32, i32) {
    %c0_i32 = arith.constant 0 : i32
    %c0_i32_0 = arith.constant 0 : i32
    %c0_i32_1 = arith.constant 0 : i32
    return %c0_i32, %c0_i32_0 : i32, i32
  }
  func.func @transform_3(%arg0: i32, %arg1: i32) -> (i32, i32) {
    %c0_i32 = arith.constant 0 : i32
    %c0_i32_0 = arith.constant 0 : i32
    return %arg0, %c0_i32 : i32, i32
  }
  func.func @transform_4(%arg0: i32, %arg1: i32) -> (i32, i32) {
    %c0_i32 = arith.constant 0 : i32
    %c0_i32_0 = arith.constant 0 : i32
    %c0_i32_1 = arith.constant 0 : i32
    return %c0_i32, %c0_i32_0 : i32, i32
  }
  func.func @transform_5(%arg0: i32, %arg1: i32) -> (i32, i32) {
    %c0_i32 = arith.constant 0 : i32
    %c0_i32_0 = arith.constant 0 : i32
    %c0_i32_1 = arith.constant 0 : i32
    return %c0_i32, %c0_i32_0 : i32, i32
  }
  func.func @transform_6(%arg0: i32, %arg1: i32) -> (i32, i32) {
    %c0_i32 = arith.constant 0 : i32
    %c0_i32_0 = arith.constant 0 : i32
    return %arg0, %c0_i32 : i32, i32
  }
}

module attributes {stable_mosaic.version = 11 : i64} {
  func.func @_pool_cls_kernel(%arg0: memref<2x32xbf16, #tpu.memory_space<vmem>>, %arg1: memref<32x32xbf16, #tpu.memory_space<vmem>>, %arg2: memref<1x32xf32, #tpu.memory_space<vmem>>, %arg3: memref<32x128xbf16, #tpu.memory_space<vmem>>, %arg4: memref<1x128xf32, #tpu.memory_space<vmem>>, %arg5: memref<2x128xf32, #tpu.memory_space<vmem>>) attributes {dimension_semantics = [], scalar_prefetch = 0 : i64, scratch_operands = 0 : i64, tpu.core_type = #tpu.core_type<tc>} {
    %c0 = arith.constant 0 : index
    %c0_0 = arith.constant 0 : index
    %0 = vector.load %arg0[%c0, %c0_0] : memref<2x32xbf16, #tpu.memory_space<vmem>>, vector<2x32xbf16>
    %c0_1 = arith.constant 0 : index
    %c0_2 = arith.constant 0 : index
    %1 = vector.load %arg1[%c0_1, %c0_2] : memref<32x32xbf16, #tpu.memory_space<vmem>>, vector<32x32xbf16>
    %cst = arith.constant dense<0.000000e+00> : vector<2x32xf32>
    %2 = tpu.matmul %0, %1, %cst {dimension_numbers = #tpu.dot_dimension_numbers<[1], [0], [0], [1], [0, 0, 1, 1], [], []>} : vector<2x32xbf16>, vector<32x32xbf16>, vector<2x32xf32> -> vector<2x32xf32>
    %c0_3 = arith.constant 0 : index
    %c0_4 = arith.constant 0 : index
    %3 = vector.load %arg2[%c0_3, %c0_4] : memref<1x32xf32, #tpu.memory_space<vmem>>, vector<1x32xf32>
    %4 = vector.broadcast %3 : vector<1x32xf32> to vector<2x32xf32>
    %5 = arith.addf %2, %4 : vector<2x32xf32>
    %6 = math.tanh %5 : vector<2x32xf32>
    %7 = arith.truncf %6 : vector<2x32xf32> to vector<2x32xbf16>
    %c0_5 = arith.constant 0 : index
    %c0_6 = arith.constant 0 : index
    %8 = vector.load %arg3[%c0_5, %c0_6] : memref<32x128xbf16, #tpu.memory_space<vmem>>, vector<32x128xbf16>
    %cst_7 = arith.constant dense<0.000000e+00> : vector<2x128xf32>
    %9 = tpu.matmul %7, %8, %cst_7 {dimension_numbers = #tpu.dot_dimension_numbers<[1], [0], [0], [1], [0, 0, 1, 1], [], []>} : vector<2x32xbf16>, vector<32x128xbf16>, vector<2x128xf32> -> vector<2x128xf32>
    %c0_8 = arith.constant 0 : index
    %c0_9 = arith.constant 0 : index
    %10 = vector.load %arg4[%c0_8, %c0_9] : memref<1x128xf32, #tpu.memory_space<vmem>>, vector<1x128xf32>
    %11 = vector.broadcast %10 : vector<1x128xf32> to vector<2x128xf32>
    %12 = arith.addf %9, %11 : vector<2x128xf32>
    %c0_10 = arith.constant 0 : index
    %c0_11 = arith.constant 0 : index
    %13 = vector.load %arg5[%c0_10, %c0_11] : memref<2x128xf32, #tpu.memory_space<vmem>>, vector<2x128xf32>
    tpu.vector_store %arg5[%c0_10, %c0_11], %12 {strides = array<i32>} : memref<2x128xf32, #tpu.memory_space<vmem>>, vector<2x128xf32>,
    return
  }
}

</mosaic_0001>

<bundles_post_ra>
// kernel: closed_call.16
= control target key start
LH: loop header
LB: loop body
LE: loop exit
PB: predicated region body
PF: predicated region fallthrough
CT: control target
= control target key end

     0   :  { %vm19_vm0 = vcmask 785408   ;;  %v151_v0 = vmov 0.0   ;;  %vm152_vm1 = vmmov 0   ;;  %vm47_vm2 = vcmask 261120   ;;  %s195_s1 = inlined_call_operand.vmem [shape: bf16[32,96], index: 1, kind: input, shape index: {}]   ;;  %s196_s0 = inlined_call_operand.vmem [shape: bf16[16,32], index: 0, kind: input, shape index: {}]   ;;  %s197_s2 = inlined_call_operand.vmem [shape: f32[1,96], index: 2, kind: input, shape index: {}]   ;;  %s198_s3 = inlined_call_operand.vmem [shape: bf16[16,96], index: 3, kind: output, shape index: {}]  }
   0x1   :  { %138 = vmatprep.subr.bf16.mxu0 %v151_v0  ;;  %v148_v1 = vld [vmem:[%s195_s1] sm:$0xff]   ;;  %142 = vmatprep.mubr.msk.bf16.mxu0 %vm152_vm1, %v151_v0  ;;  %20 = vst.msk [vmem:[#allocation2] sm:$0xff] %vm19_vm0, %v151_v0  ;;  %21 = vst.msk [vmem:[#allocation2 + $0x8] sm:$0xff] %vm19_vm0, %v151_v0  ;;  %v149_v2 = vld [vmem:[%s195_s1 + $0x8] sm:$0xff]   ;;  %vm119_vm3 = vcmask 781312  }
   0x2   :  { %139 = vmatpush3.bf16.msra.mxu0 %v148_v1  ;;  %v150_v3 = vld [vmem:[%s196_s0] sm:$0xff]  }
   0x3   :  { %140 = vmatprep.subr.bf16.mxu0 %v151_v0  ;;  %v130_v12 = vld [vmem:[%s197_s2] ss:$0 sm:$0xff] }
   0x6   :  { %141 = vmatpush3.bf16.msra.mxu0 %v149_v2 }
   0x8   :  { %v22_v4 = vld [vmem:[#allocation2] sm:$0xff]  ;;  %v23_v6 = vld [vmem:[#allocation2 + $0x8] sm:$0xff] }
   0x9   :  { %143 = vmatmul.mubr.msk.bf16.vlgmr.msra.gmra.mrb[0].mxu0 %vm47_vm2, %v150_v3 }
  0xdc   :  { %v85_v5 = vpop.f32.mrb[0].mxu0 }
  0xdd   :  { %v92_v7 = vadd.f32 %v85_v5, %v22_v4  ;;  %v144_v8 = vpop.f32.mrb[1].mxu0 }
  0xde   :  { %v88_v9 = vpop.f32.mrb[2].mxu0 }
  0xdf   :  { %95 = vst.msk [vmem:[#allocation2] sm:$0xff] %vm19_vm0, %v92_v7  ;;  %v93_v10 = vadd.f32 %v88_v9, %v23_v6  ;;  %v145_v11 = vpop.f32.mrb[3].mxu0 }
  0xe1   :  { %96 = vst.msk [vmem:[#allocation2 + $0x8] sm:$0xff] %vm19_vm0, %v93_v10 }
  0xe6   :  { %v100_v13 = vld [vmem:[#allocation2] sm:$0xff] }
  0xe7   :  { %v109_v14 = vadd.f32 %v130_v12, %v100_v13 }
  0xe8   :  { %v101_v15 = vld [vmem:[#allocation2 + $0x8] sm:$0xff] }
  0xe9   :  { %v133_v16 = vpack.c.bf16 %v109_v14, %v109_v14  ;;  %v110_v17 = vadd.f32 %v130_v12, %v101_v15 }
  0xeb   :  { %120 = vst.msk [vmem:[%s198_s3] sm:$0xf] %vm119_vm3, %v133_v16  ;;  %v134_v18 = vpack.c.bf16 %v110_v17, %v110_v17 }
  0xed   :  { %121 = vst.msk [vmem:[%s198_s3 + $0x4] sm:$0xf] %vm119_vm3, %v134_v18 }

// kernel: bert_forward.2
= control target key start
LH: loop header
LB: loop body
LE: loop exit
PB: predicated region body
PF: predicated region fallthrough
CT: control target
= control target key end

     0   :  { %vm16_vm0 = vcmask 261120   ;;  %vm70_vm1 = vcmask 257024   ;;  %s129_s0 = inlined_call_operand.vmem [shape: f32[16,32], index: 0, kind: input, shape index: {}]   ;;  %s130_s1 = inlined_call_operand.vmem [shape: f32[1,32], index: 1, kind: input, shape index: {}]   ;;  %s131_s2 = inlined_call_operand.vmem [shape: f32[1,32], index: 2, kind: input, shape index: {}]   ;;  %s132_s3 = inlined_call_operand.vmem [shape: bf16[16,32], index: 3, kind: output, shape index: {}]  }
   0x1   :  { %v14_v0 = vld [vmem:[%s129_s0] sm:$0xff]  ;;  %v15_v1 = vld [vmem:[%s129_s0 + $0x8] sm:$0xff] }
   0x2   :  { %v17_v2 = vsel %vm16_vm0, %v14_v0, 0.0  ;;  %v20_v3 = vsel %vm16_vm0, %v15_v1, 0.0  ;;  %v77_v21 = vld [vmem:[%s130_s1] ss:$0 sm:$0xff] }
   0x3   :  { %18 = vadd.xlane.f32.xlu0 %v17_v2  ;;  %v78_v23 = vld [vmem:[%s131_s2] ss:$0 sm:$0xff] }
   0x7   :  { %21 = vadd.xlane.f32.xlu0 %v20_v3 }
  0x90   :  { %v19_v4 = vpop.xlane.xlu0 %18 }
  0x91   :  { %v24_v5 = vmul.f32 0.03125, %v19_v4 }
  0x93   :  { %v26_v6 = vsub.f32 %v14_v0, %v24_v5 }
  0x94   :  { %v22_v7 = vpop.xlane.xlu0 %21 }
  0x95   :  { %v25_v8 = vmul.f32 0.03125, %v22_v7  ;;  %v28_v9 = vmul.f32 %v26_v6, %v26_v6 }
  0x97   :  { %v27_v10 = vsub.f32 %v15_v1, %v25_v8  ;;  %v30_v11 = vsel %vm16_vm0, %v28_v9, 0.0 }
  0x98   :  { %31 = vadd.xlane.f32.xlu1 %v30_v11 }
  0x99   :  { %v29_v12 = vmul.f32 %v27_v10, %v27_v10 }
  0x9b   :  { %v33_v13 = vsel %vm16_vm0, %v29_v12, 0.0 }
  0x9c   :  { %34 = vadd.xlane.f32.xlu1 %v33_v13 }
 0x125   :  { %v32_v14 = vpop.xlane.xlu1 %31 }
 0x126   :  { %v36_v15 = vmul.f32 0.03125, %v32_v14 }
 0x128   :  { %v38_v16 = vadd.f32 1e-12, %v36_v15 }
 0x129   :  { %v35_v17 = vpop.xlane.xlu1 %34 }
 0x12a   :  { %83 = vrsqrt.f32 %v38_v16  ;;  %v37_v18 = vmul.f32 0.03125, %v35_v17 }
 0x12c   :  { %v39_v19 = vadd.f32 1e-12, %v37_v18 }
 0x12e   :  { %85 = vrsqrt.f32 %v39_v19 }
 0x134   :  { %v84_v20 = vpop.eup %83 }
 0x135   :  { %v42_v22 = vmul.f32 %v84_v20, %v26_v6 }
 0x137   :  { %v51_v24 = vmul.f32 %v77_v21, %v42_v22 }
 0x138   :  { %v86_v25 = vpop.eup %85 }
 0x139   :  { %v60_v26 = vadd.f32 %v78_v23, %v51_v24  ;;  %v43_v27 = vmul.f32 %v86_v25, %v27_v10 }
 0x13b   :  { %v81_v28 = vpack.c.bf16 %v60_v26, %v60_v26  ;;  %v52_v29 = vmul.f32 %v77_v21, %v43_v27 }
 0x13d   :  { %71 = vst.msk [vmem:[%s132_s3] sm:$0xf] %vm70_vm1, %v81_v28  ;;  %v61_v30 = vadd.f32 %v78_v23, %v52_v29 }
 0x13f   :  { %v82_v31 = vpack.c.bf16 %v61_v30, %v61_v30 }
 0x141   :  { %72 = vst.msk [vmem:[%s132_s3 + $0x4] sm:$0xf] %vm70_vm1, %v82_v31 }

// kernel: closed_call.18
= control target key start
LH: loop header
LB: loop body
LE: loop exit
PB: predicated region body
PF: predicated region fallthrough
CT: control target
= control target key end

     0   :  { %vm28_vm0 = vcmask 261120   ;;  %v220_v0 = vmov 0.0   ;;  %vm221_vm1 = vmmov 0   ;;  %vm178_vm2 = vcmask 257024   ;;  %s293_s1 = inlined_call_operand.vmem [shape: bf16[32,32], index: 1, kind: input, shape index: {}]   ;;  %s294_s0 = inlined_call_operand.vmem [shape: bf16[16,32], index: 0, kind: input, shape index: {}]   ;;  %s295_s3 = inlined_call_operand.vmem [shape: bf16[16,32], index: 3, kind: input, shape index: {}]   ;;  %s296_s2 = inlined_call_operand.vmem [shape: f32[1,32], index: 2, kind: input, shape index: {}]   ;;  %s297_s4 = inlined_call_operand.vmem [shape: f32[1,32], index: 4, kind: input, shape index: {}]   ;;  %s298_s5 = inlined_call_operand.vmem [shape: f32[1,32], index: 5, kind: input, shape index: {}]   ;;  %s299_s6 = inlined_call_operand.vmem [shape: bf16[16,32], index: 6, kind: output, shape index: {}]  }
   0x1   :  { %203 = vmatprep.subr.bf16.mxu0 %v220_v0  ;;  %v213_v1 = vld [vmem:[%s293_s1] sm:$0xff]   ;;  %207 = vmatprep.mubr.msk.bf16.mxu0 %vm221_vm1, %v220_v0  ;;  %29 = vst.msk [vmem:[#allocation2] sm:$0xff] %vm28_vm0, %v220_v0  ;;  %30 = vst.msk [vmem:[#allocation2 + $0x8] sm:$0xff] %vm28_vm0, %v220_v0  ;;  %v214_v2 = vld [vmem:[%s293_s1 + $0x8] sm:$0xff]  }
   0x2   :  { %204 = vmatpush3.bf16.msra.mxu0 %v213_v1  ;;  %v215_v3 = vld [vmem:[%s294_s0] sm:$0xff]  }
   0x3   :  { %205 = vmatprep.subr.bf16.mxu0 %v220_v0  ;;  %v197_v12 = vld [vmem:[%s295_s3] sm:$0xff]  }
   0x4   :  { %v189_v13 = vld [vmem:[%s296_s2] ss:$0 sm:$0xff]  ;;  %v198_v14 = vunpack.c.l.bf16 %v197_v12  ;;  %v199_v17 = vunpack.c.h.bf16 %v197_v12 }
   0x5   :  { %v190_v41 = vld [vmem:[%s297_s4] ss:$0 sm:$0xff] }
   0x6   :  { %206 = vmatpush3.bf16.msra.mxu0 %v214_v2  ;;  %v191_v43 = vld [vmem:[%s298_s5] ss:$0 sm:$0xff] }
   0x8   :  { %v31_v4 = vld [vmem:[#allocation2] sm:$0xff]  ;;  %v32_v6 = vld [vmem:[#allocation2 + $0x8] sm:$0xff] }
   0x9   :  { %208 = vmatmul.mubr.msk.bf16.vlgmr.msra.gmra.mrb[0].mxu0 %vm28_vm0, %v215_v3 }
  0xdc   :  { %v94_v5 = vpop.f32.mrb[0].mxu0 }
  0xdd   :  { %v101_v7 = vadd.f32 %v94_v5, %v31_v4  ;;  %v209_v8 = vpop.f32.mrb[1].mxu0 }
  0xde   :  { %v97_v9 = vpop.f32.mrb[2].mxu0 }
  0xdf   :  { %103 = vst.msk [vmem:[#allocation2] sm:$0xff] %vm28_vm0, %v101_v7  ;;  %v102_v10 = vadd.f32 %v97_v9, %v32_v6  ;;  %v210_v11 = vpop.f32.mrb[3].mxu0 }
  0xe1   :  { %104 = vst.msk [vmem:[#allocation2 + $0x8] sm:$0xff] %vm28_vm0, %v102_v10 }
  0xe6   :  { %v108_v15 = vld [vmem:[#allocation2] sm:$0xff] }
  0xe7   :  { %v117_v16 = vadd.f32 %v189_v13, %v108_v15 }
  0xe8   :  { %v109_v18 = vld [vmem:[#allocation2 + $0x8] sm:$0xff] }
  0xe9   :  { %v123_v19 = vadd.f32 %v198_v14, %v117_v16  ;;  %v118_v20 = vadd.f32 %v189_v13, %v109_v18 }
  0xeb   :  { %v125_v21 = vsel %vm28_vm0, %v123_v19, 0.0  ;;  %v124_v22 = vadd.f32 %v199_v17, %v118_v20 }
  0xec   :  { %126 = vadd.xlane.f32.xlu0 %v125_v21 }
  0xed   :  { %v128_v23 = vsel %vm28_vm0, %v124_v22, 0.0 }
  0xf0   :  { %129 = vadd.xlane.f32.xlu0 %v128_v23 }
 0x179   :  { %v127_v24 = vpop.xlane.xlu0 %126 }
 0x17a   :  { %v132_v25 = vmul.f32 0.03125, %v127_v24 }
 0x17c   :  { %v134_v26 = vsub.f32 %v123_v19, %v132_v25 }
 0x17d   :  { %v130_v27 = vpop.xlane.xlu0 %129 }
 0x17e   :  { %v133_v28 = vmul.f32 0.03125, %v130_v27  ;;  %v136_v29 = vmul.f32 %v134_v26, %v134_v26 }
 0x180   :  { %v135_v30 = vsub.f32 %v124_v22, %v133_v28  ;;  %v138_v31 = vsel %vm28_vm0, %v136_v29, 0.0 }
 0x181   :  { %139 = vadd.xlane.f32.xlu1 %v138_v31 }
 0x182   :  { %v137_v32 = vmul.f32 %v135_v30, %v135_v30 }
 0x184   :  { %v141_v33 = vsel %vm28_vm0, %v137_v32, 0.0 }
 0x185   :  { %142 = vadd.xlane.f32.xlu1 %v141_v33 }
 0x20e   :  { %v140_v34 = vpop.xlane.xlu1 %139 }
 0x20f   :  { %v144_v35 = vmul.f32 0.03125, %v140_v34 }
 0x211   :  { %v146_v36 = vadd.f32 1e-12, %v144_v35 }
 0x212   :  { %v143_v37 = vpop.xlane.xlu1 %142 }
 0x213   :  { %216 = vrsqrt.f32 %v146_v36  ;;  %v145_v38 = vmul.f32 0.03125, %v143_v37 }
 0x215   :  { %v147_v39 = vadd.f32 1e-12, %v145_v38 }
 0x217   :  { %218 = vrsqrt.f32 %v147_v39 }
 0x21d   :  { %v217_v40 = vpop.eup %216 }
 0x21e   :  { %v150_v42 = vmul.f32 %v217_v40, %v134_v26 }
 0x220   :  { %v159_v44 = vmul.f32 %v190_v41, %v150_v42 }
 0x221   :  { %v219_v45 = vpop.eup %218 }
 0x222   :  { %v168_v46 = vadd.f32 %v191_v43, %v159_v44  ;;  %v151_v47 = vmul.f32 %v219_v45, %v135_v30 }
 0x224   :  { %v194_v48 = vpack.c.bf16 %v168_v46, %v168_v46  ;;  %v160_v49 = vmul.f32 %v190_v41, %v151_v47 }
 0x226   :  { %179 = vst.msk [vmem:[%s299_s6] sm:$0xf] %vm178_vm2, %v194_v48  ;;  %v169_v50 = vadd.f32 %v191_v43, %v160_v49 }
 0x228   :  { %v195_v51 = vpack.c.bf16 %v169_v50, %v169_v50 }
 0x22a   :  { %180 = vst.msk [vmem:[%s299_s6 + $0x4] sm:$0xf] %vm178_vm2, %v195_v51 }

// kernel: closed_call.17
= control target key start
LH: loop header
LB: loop body
LE: loop exit
PB: predicated region body
PF: predicated region fallthrough
CT: control target
= control target key end

     0   :  { %s938_s9 = smov 0   ;;  %s940_s10 = smov 0   ;;  %s1050_s0 = inlined_call_operand.vmem [shape: bf16[2,8,96], index: 0, kind: input, shape index: {}]   ;;  %s1051_s1 = inlined_call_operand.vmem [shape: f32[2,1,8], index: 1, kind: input, shape index: {}]   ;;  %s1052_s2 = inlined_call_operand.vmem [shape: bf16[2,8,32], index: 2, kind: output, shape index: {}]  }
   0x1   :  { %s942_s11 = smov 0  }
   0x2 LB: > { %s24_s12 = sadd.s32 1, %s901_s10  ;;  %p747_p0 = scmp.ge.s32.totalorder %s905_s11, 1  ;;  %s905_s11 = sphi %s942_s11, %s12_s11   ;;  %s901_s10 = sphi %s940_s10, %s1054_s10   ;;  %s897_s9 = sphi %s938_s9, %s1053_s9  }
   0x3   : > { %p26_p1 = scmp.ge.s32.totalorder %s24_s12, 2  ;;  %p138_p2 = scmp.lt.s32.totalorder %s905_s11, 3 }
   0x5   : > { %s1056_s12 = smov (%p26_p1, %s24_s12), 0  ;;  %p139_p3 = pnand %p747_p0, %p138_p2 }
   0x6   : > { %p167_p4 = scmp.lt.s32.totalorder (!%p139_p3), %s897_s9, 1  ;;  %v907_v0 = vmov (!%p139_p3), 0.0   ;;  %vm908_vm0 = vmmov (!%p139_p3), 0   ;;  %s909_s17 = smov (!%p139_p3), 96   ;;  %vm201_vm1 = vcmask (!%p139_p3), 64512   ;;  %vm265_vm2 = vcmask (!%p139_p3), 1043456  }
   0x7   : > { %142 = sbr.rel (%p139_p3) target bundleno = 1603 (0x643), region = 28  ;;  %778 = vmatprep.subr.bf16.mxu0 (!%p139_p3), %v907_v0  ;;  %780 = vmatprep.mubr.msk.bf16.mxu0 (!%p139_p3), %vm908_vm0, %v907_v0  ;;  %s910_s18 = smov (!%p139_p3), 64   ;;  %vm653_vm3 = vcmask (!%p139_p3), 130048   ;;  %vm655_vm4 = vcmask (!%p139_p3), 195584   ;;  %vm658_vm5 = vcmask (!%p139_p3), 257024  }
   0x8   : > { %784 = vmatprep.subr.bf16.mxu1 (!%p139_p3), %v907_v0  ;;  %786 = vmatprep.mubr.msk.bf16.mxu1 (!%p139_p3), %vm908_vm0, %v907_v0  ;;  %s911_s19 = smov (!%p139_p3), 88   ;;  %s912_s23 = smov (!%p139_p3), 72  }
   0x9   : > { %s913_s24 = smov (!%p139_p3), 120   ;;  %s914_s25 = smov (!%p139_p3), 80  }
   0xa   : > { %s915_s26 = smov (!%p139_p3), 112   ;;  %s916_s27 = smov (!%p139_p3), 104  }
   0xb   : > { %s917_s28 = smov (!%p139_p3), 56   ;;  %s918_s29 = smov (!%p139_p3), 48  }
   0xc   : > { %s919_s30 = smov (!%p139_p3), 40   ;;  %s920_s3 = smov (!%p139_p3), 8  }
   0xd   : > { %s921_s4 = smov (!%p139_p3), 16   ;;  %s922_s5 = smov (!%p139_p3), 24  }
   0xe   : > { %s1058_s9 = smov (!%p167_p4, %s897_s9), 1 }
   0xf   : > { %s748_s13 = sshll.u32 %s1058_s9, 2  ;;  %s176_s22 = scalar_lea.vmem %s1051_s1, %s1058_s9 }
  0x10   : > { %s173_s16 = scalar_lea.vmem %s1050_s0, %s748_s13  ;;  %v984_v8 = vld [vmem:[%s176_s22] ss:$0 sm:$0xff]  ;;  %s183_s8 = scalar_lea.vmem %s1052_s2, %s748_s13 }
  0x11   : > { %v185_v1 = vld [vmem:[%s173_s16] sm:$0xf] }
  0x12   : > { %v970_v2 = vcombine.low %v185_v1, %v185_v1  ;;  %v187_v3 = vunpack.c.l.bf16 %v185_v1 }
  0x14   : > { %199 = vrot.lane.b32.xlu0 %v970_v2, %s909_s17  ;;  %v188_v6 = vmul.f32 0.35355338, %v187_v3  ;;  %260 = vrot.lane.b32.xlu1 %v970_v2, %s910_s18 }
  0x16   : > { %v189_v7 = vpack.c.bf16 %v188_v6, %v188_v6 }
  0x18   : > { %312 = vrot.lane.b32.xlu1 %v970_v2, %s911_s19 }
  0x86   : > { %v200_v4 = vpop.permute.xlu0 %199  ;;  %v261_v15 = vpop.permute.xlu1 %260 }
  0x87   : > { %v206_v5 = vsel %vm201_vm1, %v200_v4, 0  ;;  %v267_v16 = vsel %vm265_vm2, %v261_v15, 0 }
  0x88   : > { %779 = vmatpush3.bf16.xpose.msra.mxu0 %v206_v5  ;;  %785 = vmatpush3.bf16.msra.mxu1 %v267_v16 }
  0x89   : > { %796 = vmatprep.subr.bf16.mxu0 %v907_v0  ;;  %790 = vmatprep.subr.bf16.mxu1 %v907_v0 }
  0x8a   : > { %v313_v22 = vpop.permute.xlu1 %312 }
  0x8b   : > { %v318_v28 = vsel %vm201_vm1, %v313_v22, 0 }
  0x8f   : > { %781 = vmatmul.mubr.msk.bf16.vlgmr.msra.gmra.mrb[0].mxu0 %vm201_vm1, %v189_v7 }
  0x90   : > { %798 = vmatprep.mubr.msk.bf16.mxu0 %vm908_vm0, %v907_v0 }
 0x162   : > { %v242_v9 = vpop.f32.mrb[0].mxu0 }
 0x163   : > { %v243_v10 = vadd.f32 %v984_v8, %v242_v9  ;;  %v782_v11 = vpop.f32.mrb[1].mxu0 }
 0x164   : > { %v245_v12 = vpop.f32.mrb[2].mxu0 }
 0x165   : > { %v783_v13 = vpop.f32.mrb[3].mxu0  ;;  %v248_v14 = vsel %vm201_vm1, %v243_v10, -inf }
 0x166   : > { %249 = vmax.xlane.f32.xlu0 %v248_v14 }
 0x17c   : > { %532 = vrot.lane.b32.xlu0 %v970_v2, %s912_s23 }
 0x1f3   : > { %v250_v17 = vpop.xlane.xlu0 %249 }
 0x1f4   : > { %v251_v18 = vsub.f32 %v243_v10, %v250_v17 }
 0x1f6   : > { %v252_v19 = vmul.f32 1.442695, %v251_v18 }
 0x1f7   : > { %v533_v31 = vpop.permute.xlu0 %532 }
 0x1f8   : > { %867 = vpow2.f32 %v252_v19  ;;  %v538_v33 = vsel %vm201_vm1, %v533_v31, 0 }
 0x202   : > { %v868_v20 = vpop.eup %867 }
 0x203   : > { %v254_v21 = vsel %vm201_vm1, %v868_v20, 0.0 }
 0x204   : > { %255 = vadd.xlane.f32.xlu1 %v254_v21 }
 0x215   : > { %310 = vrot.lane.b32.xlu1 %v189_v7, %s913_s24 }
 0x219   : > { %422 = vrot.lane.b32.xlu1 %v970_v2, %s914_s25 }
 0x21d   : > { %420 = vrot.lane.b32.xlu1 %v189_v7, %s915_s26 }
 0x221   : > { %530 = vrot.lane.b32.xlu1 %v189_v7, %s916_s27 }
 0x291   : > { %v256_v23 = vpop.xlane.xlu1 %255 }
 0x292   : > { %869 = vrcp.f32 %v256_v23 }
 0x295   : > { %v311_v26 = vpop.permute.xlu1 %310 }
 0x299   : > { %v423_v29 = vpop.permute.xlu1 %422 }
 0x29a   : > { %v428_v30 = vsel %vm201_vm1, %v423_v29, 0 }
 0x29c   : > { %v870_v24 = vpop.eup %869 }
 0x29d   : > { %v258_v25 = vmul.f32 %v870_v24, %v868_v20  ;;  %v421_v32 = vpop.permute.xlu1 %420 }
 0x29f   : > { %v259_v27 = vpack.c.bf16 %v258_v25, %v258_v25 }
 0x2a1   : > { %787 = vmatmul.mubr.msk.bf16.vlgmr.msra.gmra.mrb[0].mxu1 %vm201_vm1, %v259_v27  ;;  %v531_v34 = vpop.permute.xlu1 %530 }
 0x2a2   : > { %791 = vmatpush3.bf16.xpose.msra.mxu1 %v318_v28  ;;  %792 = vmatprep.mubr.msk.bf16.mxu1 %vm908_vm0, %v907_v0 }
 0x2a3   : > { %802 = vmatprep.subr.bf16.mxu1 %v907_v0 }
 0x2a9   : > { %793 = vmatmul.mubr.msk.bf16.vlgmr.msra.gmra.mrb[4].mxu1 %vm201_vm1, %v311_v26 }
 0x2aa   : > { %803 = vmatpush3.bf16.xpose.msra.mxu1 %v428_v30  ;;  %804 = vmatprep.mubr.msk.bf16.mxu1 %vm908_vm0, %v907_v0 }
 0x2ab   : > { %814 = vmatprep.subr.bf16.mxu1 %v907_v0 }
 0x2b1   : > { %805 = vmatmul.mubr.msk.bf16.vlgmr.msra.gmra.mrb[8].mxu1 %vm201_vm1, %v421_v32 }
 0x2b2   : > { %815 = vmatpush3.bf16.xpose.msra.mxu1 %v538_v33  ;;  %816 = vmatprep.mubr.msk.bf16.mxu1 %vm908_vm0, %v907_v0 }
 0x2b9   : > { %817 = vmatmul.mubr.msk.bf16.vlgmr.msra.gmra.mrb[12].mxu1 %vm201_vm1, %v531_v34 }
 0x374   : > { %v1008_v35 = vpop.f32.mrb[0].mxu1 }
 0x375   : > { %v788_v36 = vpop.f32.mrb[1].mxu1 }
 0x376   : > { %v306_v37 = vpop.f32.mrb[2].mxu1 }
 0x377   : > { %v789_v38 = vpop.f32.mrb[3].mxu1 }
 0x37c   : > { %v354_v39 = vpop.f32.mrb[4].mxu1 }
 0x37d   : > { %v355_v40 = vadd.f32 %v984_v8, %v354_v39  ;;  %v794_v41 = vpop.f32.mrb[5].mxu1 }
 0x37e   : > { %v357_v42 = vpop.f32.mrb[6].mxu1 }
 0x37f   : > { %v795_v43 = vpop.f32.mrb[7].mxu1  ;;  %v360_v44 = vsel %vm201_vm1, %v355_v40, -inf }
 0x380   : > { %361 = vmax.xlane.f32.xlu1 %v360_v44 }
 0x384   : > { %v464_v45 = vpop.f32.mrb[8].mxu1 }
 0x385   : > { %v465_v46 = vadd.f32 %v984_v8, %v464_v45  ;;  %v806_v47 = vpop.f32.mrb[9].mxu1 }
 0x386   : > { %v467_v48 = vpop.f32.mrb[10].mxu1 }
 0x387   : > { %v470_v49 = vsel %vm201_vm1, %v465_v46, -inf  ;;  %v807_v50 = vpop.f32.mrb[11].mxu1 }
 0x388   : > { %471 = vmax.xlane.f32.xlu0 %v470_v49 }
 0x38c   : > { %v574_v51 = vpop.f32.mrb[12].mxu1 }
 0x38d   : > { %v575_v52 = vadd.f32 %v984_v8, %v574_v51  ;;  %v818_v53 = vpop.f32.mrb[13].mxu1 }
 0x38e   : > { %v577_v54 = vpop.f32.mrb[14].mxu1 }
 0x38f   : > { %v580_v55 = vsel %vm201_vm1, %v575_v52, -inf  ;;  %v819_v56 = vpop.f32.mrb[15].mxu1 }
 0x390   : > { %581 = vmax.xlane.f32.xlu1 %v580_v55 }
 0x40d   : > { %v362_v57 = vpop.xlane.xlu1 %361 }
 0x40e   : > { %v363_v58 = vsub.f32 %v355_v40, %v362_v57 }
 0x410   : > { %v364_v59 = vmul.f32 1.442695, %v363_v58 }
 0x412   : > { %871 = vpow2.f32 %v364_v59 }
 0x415   : > { %v472_v5 = vpop.xlane.xlu0 %471 }
 0x416   : > { %v473_v6 = vsub.f32 %v465_v46, %v472_v5 }
 0x418   : > { %v474_v7 = vmul.f32 1.442695, %v473_v6 }
 0x41c   : > { %v872_v60 = vpop.eup %871 }
 0x41d   : > { %v582_v61 = vpop.xlane.xlu1 %581  ;;  %v366_v62 = vsel %vm201_vm1, %v872_v60, 0.0 }
 0x41e   : > { %v583_v63 = vsub.f32 %v575_v52, %v582_v61  ;;  %367 = vadd.xlane.f32.xlu1 %v366_v62 }
 0x420   : > { %v584_v1 = vmul.f32 1.442695, %v583_v63 }
 0x422   : > { %873 = vpow2.f32 %v584_v1 }
 0x423   : > { %875 = vpow2.f32 %v474_v7 }
 0x42c   : > { %v874_v3 = vpop.eup %873 }
 0x42d   : > { %v586_v4 = vsel %vm201_vm1, %v874_v3, 0.0  ;;  %v876_v8 = vpop.eup %875 }
 0x42e   : > { %587 = vadd.xlane.f32.xlu0 %v586_v4  ;;  %v476_v9 = vsel %vm201_vm1, %v876_v8, 0.0 }
 0x42f   : > { %372 = vrot.lane.b32.xlu1 %v970_v2, %s917_s28 }
 0x444   : > { %482 = vrot.lane.b32.xlu0 %v970_v2, %s918_s29 }
 0x453   : > { %477 = vadd.xlane.f32.xlu1 %v476_v9 }
 0x464   : > { %592 = vrot.lane.b32.xlu1 %v970_v2, %s919_s30 }
 0x4ab   : > { %v368_v10 = vpop.xlane.xlu1 %367 }
 0x4ac   : > { %877 = vrcp.f32 %v368_v10 }
 0x4af   : > { %v373_v11 = vpop.permute.xlu1 %372 }
 0x4b0   : > { %v378_v12 = vsel %vm265_vm2, %v373_v11, 0 }
 0x4b1   : > { %797 = vmatpush3.bf16.msra.mxu0 %v378_v12 }
 0x4b2   : > { %808 = vmatprep.subr.bf16.mxu0 %v907_v0 }
 0x4b6   : > { %v878_v13 = vpop.eup %877 }
 0x4b7   : > { %v370_v14 = vmul.f32 %v878_v13, %v872_v60 }
 0x4b9   : > { %v371_v15 = vpack.c.bf16 %v370_v14, %v370_v14 }
 0x4bb   : > { %799 = vmatmul.mubr.msk.bf16.vlgmr.msra.gmra.mrb[4].mxu0 %vm201_vm1, %v371_v15  ;;  %v588_v16 = vpop.xlane.xlu0 %587 }
 0x4bc   : > { %810 = vmatprep.mubr.msk.bf16.mxu0 %vm908_vm0, %v907_v0 }
 0x4bf   : > { %v483_v17 = vpop.permute.xlu0 %482 }
 0x4c0   : > { %v488_v2 = vsel %vm265_vm2, %v483_v17, 0 }
 0x4c1   : > { %809 = vmatpush3.bf16.msra.mxu0 %v488_v2 }
 0x4c2   : > { %820 = vmatprep.subr.bf16.mxu0 %v907_v0 }
 0x4e0   : > { %v478_v18 = vpop.xlane.xlu1 %477 }
 0x4e1   : > { %879 = vrcp.f32 %v478_v18 }
 0x4e2   : > { %881 = vrcp.f32 %v588_v16 }
 0x4e4   : > { %v593_v20 = vpop.permute.xlu1 %592 }
 0x4e5   : > { %v598_v22 = vsel %vm265_vm2, %v593_v20, 0 }
 0x4eb   : > { %v880_v19 = vpop.eup %879 }
 0x4ec   : > { %v480_v21 = vmul.f32 %v880_v19, %v876_v8  ;;  %v882_v24 = vpop.eup %881 }
 0x4ed   : > { %v590_v25 = vmul.f32 %v882_v24, %v874_v3 }
 0x4ee   : > { %v481_v23 = vpack.c.bf16 %v480_v21, %v480_v21 }
 0x4ef   : > { %v591_v26 = vpack.c.bf16 %v590_v25, %v590_v25 }
 0x4f0   : > { %811 = vmatmul.mubr.msk.bf16.vlgmr.msra.gmra.mrb[8].mxu0 %vm201_vm1, %v481_v23 }
 0x4f1   : > { %821 = vmatpush3.bf16.msra.mxu0 %v598_v22  ;;  %822 = vmatprep.mubr.msk.bf16.mxu0 %vm908_vm0, %v907_v0 }
 0x4f8   : > { %823 = vmatmul.mubr.msk.bf16.vlgmr.msra.gmra.mrb[12].mxu0 %vm201_vm1, %v591_v26 }
 0x58e   : > { %v414_v27 = vpop.f32.mrb[4].mxu0 }
 0x58f   : > { %641 = vrot.lane.b32.xlu1 %v414_v27, %s920_s3  ;;  %v800_v28 = vpop.f32.mrb[5].mxu0 }
 0x590   : > { %v417_v29 = vpop.f32.mrb[6].mxu0 }
 0x591   : > { %v801_v30 = vpop.f32.mrb[7].mxu0 }
 0x5c3   : > { %v524_v31 = vpop.f32.mrb[8].mxu0 }
 0x5c4   : > { %645 = vrot.lane.b32.xlu0 %v524_v31, %s921_s4  ;;  %v812_v32 = vpop.f32.mrb[9].mxu0 }
 0x5c5   : > { %v527_v33 = vpop.f32.mrb[10].mxu0 }
 0x5c6   : > { %v813_v34 = vpop.f32.mrb[11].mxu0 }
 0x5cb   : > { %v634_v36 = vpop.f32.mrb[12].mxu0 }
 0x5cc   : > { %649 = vrot.lane.b32.xlu1 %v634_v36, %s922_s5  ;;  %v824_v0 = vpop.f32.mrb[13].mxu0 }
 0x5cd   : > { %v637_v37 = vpop.f32.mrb[14].mxu0 }
 0x5ce   : > { %v825_v38 = vpop.f32.mrb[15].mxu0 }
 0x601   : > { %v642_v39 = vpop.permute.xlu1 %641 }
 0x602   : > { %v652_v41 = vsel %vm201_vm1, %v1008_v35, %v642_v39 }
 0x636   : > { %v646_v40 = vpop.permute.xlu0 %645 }
 0x637   : > { %v654_v42 = vsel %vm653_vm3, %v652_v41, %v646_v40 }
 0x63e   : > { %v650_v43 = vpop.permute.xlu1 %649 }
 0x63f   : > { %v656_v44 = vsel %vm655_vm4, %v654_v42, %v650_v43 }
 0x640   : > { %v657_v45 = vpack.c.bf16 %v656_v44, %v656_v44 }
 0x642   : > { %659 = vst.msk [vmem:[%s183_s8] sm:$0xf] %vm658_vm5, %v657_v45 }
 0x643 PF: > { %s12_s11 = sadd.s32 1, %s905_s11   ;;  %s1053_s9 = smov %s901_s10 }
 0x644   : > { %p9_p5 = scmp.ge.s32.totalorder %s12_s11, 4   ;;  %s1054_s10 = smov %s1056_s12 }
 0x646   :  { %11 = sbr.rel (!%p9_p5) target bundleno = 2 (0x2), region = 61 }

// kernel: closed_call.19
= control target key start
LH: loop header
LB: loop body
LE: loop exit
PB: predicated region body
PF: predicated region fallthrough
CT: control target
= control target key end

     0   :  { %vm19_vm0 = vcmask 523264   ;;  %v173_v0 = vmov 0.0   ;;  %vm174_vm1 = vmmov 0   ;;  %vm47_vm2 = vcmask 261120   ;;  %s217_s1 = inlined_call_operand.vmem [shape: bf16[32,64], index: 1, kind: input, shape index: {}]   ;;  %s218_s0 = inlined_call_operand.vmem [shape: bf16[16,32], index: 0, kind: input, shape index: {}]   ;;  %s219_s2 = inlined_call_operand.vmem [shape: f32[1,64], index: 2, kind: input, shape index: {}]   ;;  %s220_s3 = inlined_call_operand.vmem [shape: bf16[16,64], index: 3, kind: output, shape index: {}]  }
   0x1   :  { %156 = vmatprep.subr.bf16.mxu0 %v173_v0  ;;  %v166_v1 = vld [vmem:[%s217_s1] sm:$0xff]   ;;  %160 = vmatprep.mubr.msk.bf16.mxu0 %vm174_vm1, %v173_v0  ;;  %20 = vst.msk [vmem:[#allocation2] sm:$0xff] %vm19_vm0, %v173_v0  ;;  %21 = vst.msk [vmem:[#allocation2 + $0x8] sm:$0xff] %vm19_vm0, %v173_v0  ;;  %v167_v2 = vld [vmem:[%s217_s1 + $0x8] sm:$0xff]   ;;  %vm137_vm3 = vcmask 519168  }
   0x2   :  { %157 = vmatpush3.bf16.msra.mxu0 %v166_v1  ;;  %v168_v3 = vld [vmem:[%s218_s0] sm:$0xff]  }
   0x3   :  { %158 = vmatprep.subr.bf16.mxu0 %v173_v0  ;;  %v148_v12 = vld [vmem:[%s219_s2] ss:$0 sm:$0xff] }
   0x6   :  { %159 = vmatpush3.bf16.msra.mxu0 %v167_v2 }
   0x8   :  { %v22_v4 = vld [vmem:[#allocation2] sm:$0xff]  ;;  %v23_v6 = vld [vmem:[#allocation2 + $0x8] sm:$0xff] }
   0x9   :  { %161 = vmatmul.mubr.msk.bf16.vlgmr.msra.gmra.mrb[0].mxu0 %vm47_vm2, %v168_v3 }
  0xdc   :  { %v85_v5 = vpop.f32.mrb[0].mxu0 }
  0xdd   :  { %v92_v7 = vadd.f32 %v85_v5, %v22_v4  ;;  %v162_v8 = vpop.f32.mrb[1].mxu0 }
  0xde   :  { %v88_v9 = vpop.f32.mrb[2].mxu0 }
  0xdf   :  { %95 = vst.msk [vmem:[#allocation2] sm:$0xff] %vm19_vm0, %v92_v7  ;;  %v93_v10 = vadd.f32 %v88_v9, %v23_v6  ;;  %v163_v11 = vpop.f32.mrb[3].mxu0 }
  0xe1   :  { %96 = vst.msk [vmem:[#allocation2 + $0x8] sm:$0xff] %vm19_vm0, %v93_v10 }
  0xe6   :  { %v100_v13 = vld [vmem:[#allocation2] sm:$0xff] }
  0xe7   :  { %v109_v14 = vadd.f32 %v148_v12, %v100_v13 }
  0xe8   :  { %v101_v15 = vld [vmem:[#allocation2 + $0x8] sm:$0xff] }
  0xe9   :  { %v111_v16 = vmul.f32 %v109_v14, %v109_v14  ;;  %v110_v17 = vadd.f32 %v148_v12, %v101_v15 }
  0xeb   :  { %v113_v18 = vmul.f32 %v111_v16, %v109_v14  ;;  %v112_v19 = vmul.f32 %v110_v17, %v110_v17 }
  0xed   :  { %v115_v20 = vmul.f32 0.044715, %v113_v18  ;;  %v114_v21 = vmul.f32 %v112_v19, %v110_v17 }
  0xef   :  { %v117_v22 = vadd.f32 %v115_v20, %v109_v14  ;;  %v116_v23 = vmul.f32 0.044715, %v114_v21 }
  0xf1   :  { %v119_v24 = vmul.f32 0.7978846, %v117_v22  ;;  %v118_v25 = vadd.f32 %v116_v23, %v110_v17 }
  0xf3   :  { %169 = vtanh.f32 %v119_v24  ;;  %v120_v26 = vmul.f32 0.7978846, %v118_v25 }
  0xf5   :  { %171 = vtanh.f32 %v120_v26 }
  0xfd   :  { %v170_v27 = vpop.eup %169 }
  0xfe   :  { %v123_v28 = vadd.f32 1.0, %v170_v27 }
  0xff   :  { %v172_v29 = vpop.eup %171 }
 0x100   :  { %v125_v30 = vmul.f32 0.5, %v123_v28  ;;  %v124_v31 = vadd.f32 1.0, %v172_v29 }
 0x102   :  { %v127_v32 = vmul.f32 %v125_v30, %v109_v14  ;;  %v126_v33 = vmul.f32 0.5, %v124_v31 }
 0x104   :  { %v151_v34 = vpack.c.bf16 %v127_v32, %v127_v32  ;;  %v128_v35 = vmul.f32 %v126_v33, %v110_v17 }
 0x106   :  { %138 = vst.msk [vmem:[%s220_s3] sm:$0xf] %vm137_vm3, %v151_v34  ;;  %v152_v36 = vpack.c.bf16 %v128_v35, %v128_v35 }
 0x108   :  { %139 = vst.msk [vmem:[%s220_s3 + $0x4] sm:$0xf] %vm137_vm3, %v152_v36 }

// kernel: bert_forward.3
= control target key start
LH: loop header
LB: loop body
LE: loop exit
PB: predicated region body
PF: predicated region fallthrough
CT: control target
= control target key end

     0   :  { %v200_v0 = vmov 0.0   ;;  %vm201_vm0 = vmmov 0   ;;  %vm45_vm1 = vcmask 261120   ;;  %s258_s1 = inlined_call_operand.vmem [shape: bf16[32,32], index: 1, kind: input, shape index: {}]   ;;  %s259_s0 = inlined_call_operand.vmem [shape: bf16[2,32], index: 0, kind: input, shape index: {}]   ;;  %s260_s3 = inlined_call_operand.vmem [shape: bf16[32,128], index: 3, kind: input, shape index: {}]   ;;  %s261_s2 = inlined_call_operand.vmem [shape: f32[1,32], index: 2, kind: input, shape index: {}]   ;;  %s262_s4 = inlined_call_operand.vmem [shape: f32[1,128], index: 4, kind: input, shape index: {}]   ;;  %s263_s5 = inlined_call_operand.vmem [shape: f32[2,128], index: 5, kind: output, shape index: {}]  }
   0x1   :  { %176 = vmatprep.subr.bf16.mxu0 %v200_v0  ;;  %v194_v1 = vld [vmem:[%s258_s1] sm:$0xff]   ;;  %180 = vmatprep.mubr.msk.bf16.mxu0 %vm201_vm0, %v200_v0  ;;  %v195_v2 = vld [vmem:[%s258_s1 + $0x8] sm:$0xff]  }
   0x2   :  { %184 = vmatprep.subr.bf16.mxu1 %v200_v0  ;;  %188 = vmatprep.mubr.msk.bf16.mxu1 %vm201_vm0, %v200_v0  ;;  %v21_v3 = vld [vmem:[%s259_s0] sm:$0x1]  ;;  %v197_v5 = vld [vmem:[%s260_s3 + $0x8] sm:$0xff]  }
   0x3   :  { %177 = vmatpush3.bf16.msra.mxu0 %v194_v1  ;;  %v196_v4 = vld [vmem:[%s260_s3] sm:$0xff]  }
   0x4   :  { %178 = vmatprep.subr.bf16.mxu0 %v200_v0  ;;  %185 = vmatpush3.bf16.msra.mxu1 %v196_v4  ;;  %v162_v6 = vld [vmem:[%s261_s2] ss:$0 sm:$0xff] }
   0x5   :  { %186 = vmatprep.subr.bf16.mxu1 %v200_v0  ;;  %v166_v14 = vld [vmem:[%s262_s4] ss:$0 sm:$0xff] }
   0x7   :  { %179 = vmatpush3.bf16.msra.mxu0 %v195_v2 }
   0x8   :  { %187 = vmatpush3.bf16.msra.mxu1 %v197_v5 }
   0xa   :  { %181 = vmatmul.mubr.msk.bf16.vlgmr.msra.gmra.mrb[0].mxu0 %vm45_vm1, %v21_v3 }
  0xdd   :  { %v83_v7 = vpop.f32.mrb[0].mxu0 }
  0xde   :  { %v84_v8 = vadd.f32 %v162_v6, %v83_v7  ;;  %v182_v9 = vpop.f32.mrb[1].mxu0 }
  0xdf   :  { %v86_v10 = vpop.f32.mrb[2].mxu0 }
  0xe0   :  { %198 = vtanh.f32 %v84_v8  ;;  %v183_v11 = vpop.f32.mrb[3].mxu0 }
  0xea   :  { %v199_v12 = vpop.eup %198 }
  0xeb   :  { %v90_v13 = vpack.c.bf16 %v199_v12, %v199_v12 }
  0xed   :  { %189 = vmatmul.mubr.msk.bf16.vlgmr.msra.gmra.mrb[0].mxu1 %vm45_vm1, %v90_v13 }
 0x1c0   :  { %v151_v15 = vpop.f32.mrb[0].mxu1 }
 0x1c1   :  { %v152_v16 = vadd.f32 %v166_v14, %v151_v15  ;;  %v190_v17 = vpop.f32.mrb[1].mxu1 }
 0x1c2   :  { %v154_v18 = vpop.f32.mrb[2].mxu1 }
 0x1c3   :  { %157 = vst [vmem:[%s263_s5] sm:$0x3] %v152_v16  ;;  %v191_v19 = vpop.f32.mrb[3].mxu1 }

// kernel: closed_call.20
= control target key start
LH: loop header
LB: loop body
LE: loop exit
PB: predicated region body
PF: predicated region fallthrough
CT: control target
= control target key end

     0   :  { %vm28_vm0 = vcmask 261120   ;;  %v247_v0 = vmov 0.0   ;;  %vm248_vm1 = vmmov 0   ;;  %vm72_vm2 = vcmask 523264   ;;  %s325_s1 = inlined_call_operand.vmem [shape: bf16[64,32], index: 1, kind: input, shape index: {}]   ;;  %s326_s0 = inlined_call_operand.vmem [shape: bf16[16,64], index: 0, kind: input, shape index: {}]   ;;  %s327_s3 = inlined_call_operand.vmem [shape: bf16[16,32], index: 3, kind: input, shape index: {}]   ;;  %s328_s2 = inlined_call_operand.vmem [shape: f32[1,32], index: 2, kind: input, shape index: {}]   ;;  %s329_s4 = inlined_call_operand.vmem [shape: f32[1,32], index: 4, kind: input, shape index: {}]   ;;  %s330_s5 = inlined_call_operand.vmem [shape: f32[1,32], index: 5, kind: input, shape index: {}]   ;;  %s331_s6 = inlined_call_operand.vmem [shape: bf16[16,32], index: 6, kind: output, shape index: {}]  }
   0x1   :  { %224 = vmatprep.subr.bf16.mxu0 %v247_v0  ;;  %v238_v1 = vld [vmem:[%s325_s1] sm:$0xff]   ;;  %232 = vmatprep.mubr.msk.bf16.mxu0 %vm248_vm1, %v247_v0  ;;  %29 = vst.msk [vmem:[#allocation2] sm:$0xff] %vm28_vm0, %v247_v0  ;;  %30 = vst.msk [vmem:[#allocation2 + $0x8] sm:$0xff] %vm28_vm0, %v247_v0  ;;  %v239_v2 = vld [vmem:[%s325_s1 + $0x8] sm:$0xff]   ;;  %vm195_vm3 = vcmask 257024  }
   0x2   :  { %225 = vmatpush3.bf16.msra.mxu0 %v238_v1  ;;  %v240_v3 = vld [vmem:[%s325_s1 + $0x10] sm:$0xff]   ;;  %v241_v4 = vld [vmem:[%s325_s1 + $0x18] sm:$0xff]   ;;  %v242_v5 = vld [vmem:[%s326_s0] sm:$0xff]  }
   0x3   :  { %226 = vmatprep.subr.bf16.mxu0 %v247_v0  ;;  %v216_v14 = vld [vmem:[%s327_s3] sm:$0xff]  }
   0x4   :  { %v208_v15 = vld [vmem:[%s328_s2] ss:$0 sm:$0xff]  ;;  %v217_v16 = vunpack.c.l.bf16 %v216_v14  ;;  %v218_v19 = vunpack.c.h.bf16 %v216_v14 }
   0x5   :  { %v209_v43 = vld [vmem:[%s329_s4] ss:$0 sm:$0xff] }
   0x6   :  { %227 = vmatpush3.bf16.msra.mxu0 %v239_v2  ;;  %v210_v45 = vld [vmem:[%s330_s5] ss:$0 sm:$0xff] }
   0x7   :  { %228 = vmatprep.subr.bf16.mxu0 %v247_v0 }
   0x8   :  { %v31_v6 = vld [vmem:[#allocation2] sm:$0xff]  ;;  %v32_v8 = vld [vmem:[#allocation2 + $0x8] sm:$0xff] }
   0xa   :  { %229 = vmatpush3.bf16.msra.mxu0 %v240_v3 }
   0xb   :  { %230 = vmatprep.subr.bf16.mxu0 %v247_v0 }
   0xe   :  { %231 = vmatpush3.bf16.msra.mxu0 %v241_v4 }
  0x11   :  { %233 = vmatmul.mubr.msk.bf16.vlgmr.msra.gmra.mrb[0].mxu0 %vm72_vm2, %v242_v5 }
  0xe4   :  { %v110_v7 = vpop.f32.mrb[0].mxu0 }
  0xe5   :  { %v117_v9 = vadd.f32 %v110_v7, %v31_v6  ;;  %v234_v10 = vpop.f32.mrb[1].mxu0 }
  0xe6   :  { %v113_v11 = vpop.f32.mrb[2].mxu0 }
  0xe7   :  { %120 = vst.msk [vmem:[#allocation2] sm:$0xff] %vm28_vm0, %v117_v9  ;;  %v118_v12 = vadd.f32 %v113_v11, %v32_v8  ;;  %v235_v13 = vpop.f32.mrb[3].mxu0 }
  0xe9   :  { %121 = vst.msk [vmem:[#allocation2 + $0x8] sm:$0xff] %vm28_vm0, %v118_v12 }
  0xee   :  { %v125_v17 = vld [vmem:[#allocation2] sm:$0xff] }
  0xef   :  { %v134_v18 = vadd.f32 %v208_v15, %v125_v17 }
  0xf0   :  { %v126_v20 = vld [vmem:[#allocation2 + $0x8] sm:$0xff] }
  0xf1   :  { %v140_v21 = vadd.f32 %v217_v16, %v134_v18  ;;  %v135_v22 = vadd.f32 %v208_v15, %v126_v20 }
  0xf3   :  { %v142_v23 = vsel %vm28_vm0, %v140_v21, 0.0  ;;  %v141_v24 = vadd.f32 %v218_v19, %v135_v22 }
  0xf4   :  { %143 = vadd.xlane.f32.xlu0 %v142_v23 }
  0xf5   :  { %v145_v25 = vsel %vm28_vm0, %v141_v24, 0.0 }
  0xf8   :  { %146 = vadd.xlane.f32.xlu0 %v145_v25 }
 0x181   :  { %v144_v26 = vpop.xlane.xlu0 %143 }
 0x182   :  { %v149_v27 = vmul.f32 0.03125, %v144_v26 }
 0x184   :  { %v151_v28 = vsub.f32 %v140_v21, %v149_v27 }
 0x185   :  { %v147_v29 = vpop.xlane.xlu0 %146 }
 0x186   :  { %v150_v30 = vmul.f32 0.03125, %v147_v29  ;;  %v153_v31 = vmul.f32 %v151_v28, %v151_v28 }
 0x188   :  { %v152_v32 = vsub.f32 %v141_v24, %v150_v30  ;;  %v155_v33 = vsel %vm28_vm0, %v153_v31, 0.0 }
 0x189   :  { %156 = vadd.xlane.f32.xlu1 %v155_v33 }
 0x18a   :  { %v154_v34 = vmul.f32 %v152_v32, %v152_v32 }
 0x18c   :  { %v158_v35 = vsel %vm28_vm0, %v154_v34, 0.0 }
 0x18d   :  { %159 = vadd.xlane.f32.xlu1 %v158_v35 }
 0x216   :  { %v157_v36 = vpop.xlane.xlu1 %156 }
 0x217   :  { %v161_v37 = vmul.f32 0.03125, %v157_v36 }
 0x219   :  { %v163_v38 = vadd.f32 1e-12, %v161_v37 }
 0x21a   :  { %v160_v39 = vpop.xlane.xlu1 %159 }
 0x21b   :  { %243 = vrsqrt.f32 %v163_v38  ;;  %v162_v40 = vmul.f32 0.03125, %v160_v39 }
 0x21d   :  { %v164_v41 = vadd.f32 1e-12, %v162_v40 }
 0x21f   :  { %245 = vrsqrt.f32 %v164_v41 }
 0x225   :  { %v244_v42 = vpop.eup %243 }
 0x226   :  { %v167_v44 = vmul.f32 %v244_v42, %v151_v28 }
 0x228   :  { %v176_v46 = vmul.f32 %v209_v43, %v167_v44 }
 0x229   :  { %v246_v47 = vpop.eup %245 }
 0x22a   :  { %v185_v48 = vadd.f32 %v210_v45, %v176_v46  ;;  %v168_v49 = vmul.f32 %v246_v47, %v152_v32 }
 0x22c   :  { %v213_v50 = vpack.c.bf16 %v185_v48, %v185_v48  ;;  %v177_v51 = vmul.f32 %v209_v43, %v168_v49 }
 0x22e   :  { %196 = vst.msk [vmem:[%s331_s6] sm:$0xf] %vm195_vm3, %v213_v50  ;;  %v186_v52 = vadd.f32 %v210_v45, %v177_v51 }
 0x230   :  { %v214_v53 = vpack.c.bf16 %v186_v52, %v186_v52 }
 0x232   :  { %197 = vst.msk [vmem:[%s331_s6 + $0x4] sm:$0xf] %vm195_vm3, %v214_v53 }

</bundles_post_ra>
